<compile_context>
chip_gen: v6e
topology: v6e:2x2x1
jax: 0.10.0
libtpu: 0.0.40
codegen_flags: <defaults>
</compile_context>

<pallas_src>
import functools

import jax
import jax.numpy as jnp
from jax import lax
from jax.experimental import pallas as pl
from jax.experimental.pallas import tpu as pltpu


# ---------------------------------------------------------------------------
# Fused kernel: embedding gather + stacked LSTM + last-step Linear/LogSoftmax.
# ---------------------------------------------------------------------------
def _langid_fused_kernel(*refs, T, H, L):
    """Ref layout (inputs, then output, then scratch):
      [0]  ids_ref    SMEM (T,)   int32 token ids
      [1]  emb_ref    VMEM (V, E) embedding table
      per layer l:    wih_t (in_dim_l, 4H), whh_t (H, 4H), bias (1, 4H)
      then            h0 (L, H), c0 (L, H), wout_t (H, C), bout (1, C)
      output          out_ref (1, C)
      scratch         x_buf (T, E), h_buf (T, H)
    """
    ids_ref = refs[0]
    emb_ref = refs[1]
    layer_w = []
    p = 2
    for _ in range(L):
        layer_w.append((refs[p], refs[p + 1], refs[p + 2]))
        p += 3
    h0_ref, c0_ref, wout_t_ref, bout_ref = refs[p], refs[p + 1], refs[p + 2], refs[p + 3]
    out_ref = refs[p + 4]
    x_buf = refs[p + 5]
    h_buf = refs[p + 6]

    # ---- Embedding gather: ids live in SMEM, table stays in VMEM. ----
    for t in range(T):
        idx = ids_ref[t]
        x_buf[pl.ds(t, 1), :] = emb_ref[pl.ds(idx, 1), :]

    # Lane mask selecting the "g" gate block (PyTorch gate order i, f, g, o).
    lane = lax.broadcasted_iota(jnp.int32, (1, 4 * H), 1)
    is_g_lane = (lane >= 2 * H) & (lane < 3 * H)

    acts = x_buf[...]                                   # (T, in_dim) layer input
    h = None
    for l in range(L):
        wih_t_ref, whh_t_ref, b_ref = layer_w[l]
        whh_t = whh_t_ref[...]                          # (H, 4H), live across loop
        # Hoisted input projection + fused bias for the whole sequence.
        gates_x = jnp.dot(acts, wih_t_ref[...],
                          preferred_element_type=jnp.float32) + b_ref[...]  # (T, 4H)

        h = h0_ref[pl.ds(l, 1), :]                      # (1, H)
        c = c0_ref[pl.ds(l, 1), :]                      # (1, H)

        # Serial recurrence, fully unrolled (T static & small).
        for t in range(T):
            gates = gates_x[t:t + 1, :] + jnp.dot(
                h, whh_t, preferred_element_type=jnp.float32)               # (1, 4H)
            # Two EUP issues cover all four gates; select g lanes via mask.
            sig_all = jax.nn.sigmoid(gates)
            tanh_all = jnp.tanh(gates)
            act = jnp.where(is_g_lane, tanh_all, sig_all)
            i_g = act[:, 0 * H:1 * H]
            f_g = act[:, 1 * H:2 * H]
            g_g = act[:, 2 * H:3 * H]
            o_g = act[:, 3 * H:4 * H]
            c = f_g * c + i_g * g_g
            h = o_g * jnp.tanh(c)
            if l < L - 1:
                h_buf[pl.ds(t, 1), :] = h               # feed next layer
        if l < L - 1:
            acts = h_buf[...]

    # ---- Classifier + log-softmax on the LAST timestep only. ----
    logits = (jnp.dot(h, wout_t_ref[...], preferred_element_type=jnp.float32)
              + bout_ref[...])                          # (1, C)
    m = jnp.max(logits, axis=-1, keepdims=True)
    z = logits - m
    lse = jnp.log(jnp.sum(jnp.exp(z), axis=-1, keepdims=True))
    out_ref[...] = z - lse


# ---------------------------------------------------------------------------
# Full LangID forward pass (single pallas_call).
# ---------------------------------------------------------------------------
def langid_forward(params, sentence_tensor):
    """sentence_tensor: int32 (1, T) token ids (batch_first, batch=1).
    Returns (C,) log-probabilities for the last timestep, matching
    PyTorch's `self.softmax(self.output(lstm_out)).squeeze()[-1]`."""
    ids = sentence_tensor.reshape(-1).astype(jnp.int32)           # (T,)
    T = ids.shape[0]
    L = params["lstm_layers"]
    H = params["lstm"][0]["w_hh"].shape[1]
    E = params["embedding"].shape[1]
    C = params["w_out"].shape[0]

    smem = pl.BlockSpec(memory_space=pltpu.MemorySpace.SMEM)
    vmem = pl.BlockSpec(memory_space=pltpu.MemorySpace.VMEM)

    inputs = [ids, params["embedding"]]
    in_specs = [smem, vmem]
    for l in range(L):
        wl = params["lstm"][l]
        inputs += [
            jnp.transpose(wl["w_ih"]),                            # (in_dim, 4H)
            jnp.transpose(wl["w_hh"]),                            # (H, 4H)
            (wl["b_ih"] + wl["b_hh"]).reshape(1, 4 * H),          # (1, 4H)
        ]
        in_specs += [vmem, vmem, vmem]
    inputs += [
        params["h0"].reshape(L, H),
        params["c0"].reshape(L, H),
        jnp.transpose(params["w_out"]),                           # (H, C)
        params["b_out"].reshape(1, C),
    ]
    in_specs += [vmem, vmem, vmem, vmem]

    out = pl.pallas_call(
        functools.partial(_langid_fused_kernel, T=T, H=H, L=L),
        out_shape=jax.ShapeDtypeStruct((1, C), jnp.float32),
        in_specs=in_specs,
        out_specs=vmem,
        scratch_shapes=[
            pltpu.VMEM((T, E), jnp.float32),                      # gathered embeddings
            pltpu.VMEM((T, H), jnp.float32),                      # inter-layer activations
        ],
    )(*inputs)
    return out[0]                                                 # (C,)


# ---------------------------------------------------------------------------
# Deterministic parameter construction + example run.
# ---------------------------------------------------------------------------
def make_params(key, input_vocab_n, embedding_dims, hidden_dims, lstm_layers,
                output_class_n):
    k_emb, k_lstm, k_wout, k_bout, k_h0, k_c0 = jax.random.split(key, 6)
    scale = float(hidden_dims) ** -0.5

    embedding = jax.random.normal(k_emb, (input_vocab_n, embedding_dims),
                                  jnp.float32)

    lstm_params = []
    layer_keys = jax.random.split(k_lstm, lstm_layers)
    for l in range(lstm_layers):
        in_dim = embedding_dims if l == 0 else hidden_dims
        k0, k1, k2, k3 = jax.random.split(layer_keys[l], 4)
        lstm_params.append({
            "w_ih": jax.random.uniform(k0, (4 * hidden_dims, in_dim),
                                       jnp.float32, -scale, scale),
            "w_hh": jax.random.uniform(k1, (4 * hidden_dims, hidden_dims),
                                       jnp.float32, -scale, scale),
            "b_ih": jax.random.uniform(k2, (4 * hidden_dims,),
                                       jnp.float32, -scale, scale),
            "b_hh": jax.random.uniform(k3, (4 * hidden_dims,),
                                       jnp.float32, -scale, scale),
        })

    w_out = jax.random.uniform(k_wout, (output_class_n, hidden_dims),
                               jnp.float32, -scale, scale)
    b_out = jax.random.uniform(k_bout, (output_class_n,),
                               jnp.float32, -scale, scale)

    # PyTorch's init_hidden draws h0/c0 from randn each forward; here they are
    # drawn once deterministically (same semantic note as before).
    h0 = jax.random.normal(k_h0, (lstm_layers, 1, hidden_dims), jnp.float32)
    c0 = jax.random.normal(k_c0, (lstm_layers, 1, hidden_dims), jnp.float32)

    return {
        "embedding": embedding,
        "lstm": lstm_params,
        "lstm_layers": lstm_layers,
        "w_out": w_out,
        "b_out": b_out,
        "h0": h0,
        "c0": c0,
    }


if __name__ == "__main__":
    input_vocab_n = 30
    embedding_dims = 32
    hidden_dims = 32
    lstm_layers = 2
    output_class_n = 5
    seq_len = 8

    key = jax.random.PRNGKey(0)
    pkey, dkey = jax.random.split(key)
    params = make_params(pkey, input_vocab_n, embedding_dims, hidden_dims,
                         lstm_layers, output_class_n)

    # sentence_tensor: (batch=1, seq_len) int token ids, as the PyTorch module expects.
    sentence = jax.random.randint(dkey, (1, seq_len), 0, input_vocab_n,
                                  dtype=jnp.int32)

    out = langid_forward(params, sentence)
    out = jax.block_until_ready(out)
    assert out.shape == (output_class_n,)
    # Sanity: log-probs should (approximately) sum to 1 after exp.
    assert abs(float(jnp.exp(out).sum()) - 1.0) < 1e-4
    print("KERNEL_OK")
</pallas_src>

<mosaic_0001>
module attributes {stable_mosaic.version = 11 : i64} {
  func.func @_langid_fused_kernel(%arg0: memref<8xi32, #tpu.memory_space<smem>>, %arg1: memref<30x32xf32, #tpu.memory_space<vmem>>, %arg2: memref<32x128xf32, #tpu.memory_space<vmem>>, %arg3: memref<32x128xf32, #tpu.memory_space<vmem>>, %arg4: memref<1x128xf32, #tpu.memory_space<vmem>>, %arg5: memref<32x128xf32, #tpu.memory_space<vmem>>, %arg6: memref<32x128xf32, #tpu.memory_space<vmem>>, %arg7: memref<1x128xf32, #tpu.memory_space<vmem>>, %arg8: memref<2x32xf32, #tpu.memory_space<vmem>>, %arg9: memref<2x32xf32, #tpu.memory_space<vmem>>, %arg10: memref<32x5xf32, #tpu.memory_space<vmem>>, %arg11: memref<1x5xf32, #tpu.memory_space<vmem>>, %arg12: memref<1x5xf32, #tpu.memory_space<vmem>>, %arg13: memref<8x32xf32, #tpu.memory_space<vmem>>, %arg14: memref<8x32xf32, #tpu.memory_space<vmem>>) attributes {dimension_semantics = [], scalar_prefetch = 0 : i64, scratch_operands = 2 : i64, tpu.core_type = #tpu.core_type<tc>} {
    %c0 = arith.constant 0 : index
    %0 = memref.load %arg0[%c0] : memref<8xi32, #tpu.memory_space<smem>>
    %1 = arith.index_cast %0 : i32 to index
    %c0_0 = arith.constant 0 : index
    %2 = vector.load %arg1[%1, %c0_0] : memref<30x32xf32, #tpu.memory_space<vmem>>, vector<1x32xf32>
    %c0_1 = arith.constant 0 : index
    %c0_2 = arith.constant 0 : index
    %3 = vector.load %arg13[%c0_1, %c0_2] : memref<8x32xf32, #tpu.memory_space<vmem>>, vector<1x32xf32>
    tpu.vector_store %arg13[%c0_1, %c0_2], %2 {strides = array<i32>} : memref<8x32xf32, #tpu.memory_space<vmem>>, vector<1x32xf32>,
    %c1 = arith.constant 1 : index
    %4 = memref.load %arg0[%c1] : memref<8xi32, #tpu.memory_space<smem>>
    %5 = arith.index_cast %4 : i32 to index
    %c0_3 = arith.constant 0 : index
    %6 = vector.load %arg1[%5, %c0_3] : memref<30x32xf32, #tpu.memory_space<vmem>>, vector<1x32xf32>
    %c1_4 = arith.constant 1 : index
    %c0_5 = arith.constant 0 : index
    %7 = vector.load %arg13[%c1_4, %c0_5] : memref<8x32xf32, #tpu.memory_space<vmem>>, vector<1x32xf32>
    tpu.vector_store %arg13[%c1_4, %c0_5], %6 {strides = array<i32>} : memref<8x32xf32, #tpu.memory_space<vmem>>, vector<1x32xf32>,
    %c2 = arith.constant 2 : index
    %8 = memref.load %arg0[%c2] : memref<8xi32, #tpu.memory_space<smem>>
    %9 = arith.index_cast %8 : i32 to index
    %c0_6 = arith.constant 0 : index
    %10 = vector.load %arg1[%9, %c0_6] : memref<30x32xf32, #tpu.memory_space<vmem>>, vector<1x32xf32>
    %c2_7 = arith.constant 2 : index
    %c0_8 = arith.constant 0 : index
    %11 = vector.load %arg13[%c2_7, %c0_8] : memref<8x32xf32, #tpu.memory_space<vmem>>, vector<1x32xf32>
    tpu.vector_store %arg13[%c2_7, %c0_8], %10 {strides = array<i32>} : memref<8x32xf32, #tpu.memory_space<vmem>>, vector<1x32xf32>,
    %c3 = arith.constant 3 : index
    %12 = memref.load %arg0[%c3] : memref<8xi32, #tpu.memory_space<smem>>
    %13 = arith.index_cast %12 : i32 to index
    %c0_9 = arith.constant 0 : index
    %14 = vector.load %arg1[%13, %c0_9] : memref<30x32xf32, #tpu.memory_space<vmem>>, vector<1x32xf32>
    %c3_10 = arith.constant 3 : index
    %c0_11 = arith.constant 0 : index
    %15 = vector.load %arg13[%c3_10, %c0_11] : memref<8x32xf32, #tpu.memory_space<vmem>>, vector<1x32xf32>
    tpu.vector_store %arg13[%c3_10, %c0_11], %14 {strides = array<i32>} : memref<8x32xf32, #tpu.memory_space<vmem>>, vector<1x32xf32>,
    %c4 = arith.constant 4 : index
    %16 = memref.load %arg0[%c4] : memref<8xi32, #tpu.memory_space<smem>>
    %17 = arith.index_cast %16 : i32 to index
    %c0_12 = arith.constant 0 : index
    %18 = vector.load %arg1[%17, %c0_12] : memref<30x32xf32, #tpu.memory_space<vmem>>, vector<1x32xf32>
    %c4_13 = arith.constant 4 : index
    %c0_14 = arith.constant 0 : index
    %19 = vector.load %arg13[%c4_13, %c0_14] : memref<8x32xf32, #tpu.memory_space<vmem>>, vector<1x32xf32>
    tpu.vector_store %arg13[%c4_13, %c0_14], %18 {strides = array<i32>} : memref<8x32xf32, #tpu.memory_space<vmem>>, vector<1x32xf32>,
    %c5 = arith.constant 5 : index
    %20 = memref.load %arg0[%c5] : memref<8xi32, #tpu.memory_space<smem>>
    %21 = arith.index_cast %20 : i32 to index
    %c0_15 = arith.constant 0 : index
    %22 = vector.load %arg1[%21, %c0_15] : memref<30x32xf32, #tpu.memory_space<vmem>>, vector<1x32xf32>
    %c5_16 = arith.constant 5 : index
    %c0_17 = arith.constant 0 : index
    %23 = vector.load %arg13[%c5_16, %c0_17] : memref<8x32xf32, #tpu.memory_space<vmem>>, vector<1x32xf32>
    tpu.vector_store %arg13[%c5_16, %c0_17], %22 {strides = array<i32>} : memref<8x32xf32, #tpu.memory_space<vmem>>, vector<1x32xf32>,
    %c6 = arith.constant 6 : index
    %24 = memref.load %arg0[%c6] : memref<8xi32, #tpu.memory_space<smem>>
    %25 = arith.index_cast %24 : i32 to index
    %c0_18 = arith.constant 0 : index
    %26 = vector.load %arg1[%25, %c0_18] : memref<30x32xf32, #tpu.memory_space<vmem>>, vector<1x32xf32>
    %c6_19 = arith.constant 6 : index
    %c0_20 = arith.constant 0 : index
    %27 = vector.load %arg13[%c6_19, %c0_20] : memref<8x32xf32, #tpu.memory_space<vmem>>, vector<1x32xf32>
    tpu.vector_store %arg13[%c6_19, %c0_20], %26 {strides = array<i32>} : memref<8x32xf32, #tpu.memory_space<vmem>>, vector<1x32xf32>,
    %c7 = arith.constant 7 : index
    %28 = memref.load %arg0[%c7] : memref<8xi32, #tpu.memory_space<smem>>
    %29 = arith.index_cast %28 : i32 to index
    %c0_21 = arith.constant 0 : index
    %30 = vector.load %arg1[%29, %c0_21] : memref<30x32xf32, #tpu.memory_space<vmem>>, vector<1x32xf32>
    %c7_22 = arith.constant 7 : index
    %c0_23 = arith.constant 0 : index
    %31 = vector.load %arg13[%c7_22, %c0_23] : memref<8x32xf32, #tpu.memory_space<vmem>>, vector<1x32xf32>
    tpu.vector_store %arg13[%c7_22, %c0_23], %30 {strides = array<i32>} : memref<8x32xf32, #tpu.memory_space<vmem>>, vector<1x32xf32>,
    %32 = tpu.iota {dimensions = array<i32: 1>} : vector<1x128xi32>
    %c64_i32 = arith.constant 64 : i32
    %33 = vector.broadcast %c64_i32 : i32 to vector<1x128xi32>
    %34 = arith.cmpi sge, %32, %33 : vector<1x128xi32>
    %c96_i32 = arith.constant 96 : i32
    %35 = vector.broadcast %c96_i32 : i32 to vector<1x128xi32>
    %36 = arith.cmpi slt, %32, %35 : vector<1x128xi32>
    %37 = arith.andi %34, %36 : vector<1x128xi1>
    %c0_24 = arith.constant 0 : index
    %c0_25 = arith.constant 0 : index
    %38 = vector.load %arg13[%c0_24, %c0_25] : memref<8x32xf32, #tpu.memory_space<vmem>>, vector<8x32xf32>
    %c0_26 = arith.constant 0 : index
    %c0_27 = arith.constant 0 : index
    %39 = vector.load %arg3[%c0_26, %c0_27] : memref<32x128xf32, #tpu.memory_space<vmem>>, vector<32x128xf32>
    %c0_28 = arith.constant 0 : index
    %c0_29 = arith.constant 0 : index
    %40 = vector.load %arg2[%c0_28, %c0_29] : memref<32x128xf32, #tpu.memory_space<vmem>>, vector<32x128xf32>
    %cst = arith.constant dense<0.000000e+00> : vector<8x128xf32>
    %41 = tpu.matmul %38, %40, %cst {dimension_numbers = #tpu.dot_dimension_numbers<[1], [0], [0], [1], [0, 0, 1, 1], [], []>} : vector<8x32xf32>, vector<32x128xf32>, vector<8x128xf32> -> vector<8x128xf32>
    %c0_30 = arith.constant 0 : index
    %c0_31 = arith.constant 0 : index
    %42 = vector.load %arg4[%c0_30, %c0_31] : memref<1x128xf32, #tpu.memory_space<vmem>>, vector<1x128xf32>
    %43 = vector.broadcast %42 : vector<1x128xf32> to vector<8x128xf32>
    %44 = arith.addf %41, %43 : vector<8x128xf32>
    %c0_32 = arith.constant 0 : index
    %c0_33 = arith.constant 0 : index
    %45 = vector.load %arg8[%c0_32, %c0_33] : memref<2x32xf32, #tpu.memory_space<vmem>>, vector<1x32xf32>
    %c0_34 = arith.constant 0 : index
    %c0_35 = arith.constant 0 : index
    %46 = vector.load %arg9[%c0_34, %c0_35] : memref<2x32xf32, #tpu.memory_space<vmem>>, vector<1x32xf32>
    %47 = vector.extract_strided_slice %44 {offsets = [0, 0], sizes = [1, 128], strides = [1, 1]} : vector<8x128xf32> to vector<1x128xf32>
    %cst_36 = arith.constant dense<0.000000e+00> : vector<1x128xf32>
    %48 = tpu.matmul %45, %39, %cst_36 {dimension_numbers = #tpu.dot_dimension_numbers<[1], [0], [0], [1], [0, 0, 1, 1], [], []>} : vector<1x32xf32>, vector<32x128xf32>, vector<1x128xf32> -> vector<1x128xf32>
    %49 = arith.addf %47, %48 : vector<1x128xf32>
    %50 = arith.negf %49 : vector<1x128xf32>
    %51 = math.exp %50 : vector<1x128xf32>
    %cst_37 = arith.constant 1.000000e+00 : f32
    %52 = vector.broadcast %cst_37 : f32 to vector<1x128xf32>
    %53 = arith.addf %52, %51 : vector<1x128xf32>
    %54 = arith.divf %52, %53 : vector<1x128xf32>
    %55 = math.tanh %49 : vector<1x128xf32>
    %56 = arith.select %37, %55, %54 : vector<1x128xi1>, vector<1x128xf32>
    %57 = vector.extract_strided_slice %56 {offsets = [0, 0], sizes = [1, 32], strides = [1, 1]} : vector<1x128xf32> to vector<1x32xf32>
    %58 = vector.extract_strided_slice %56 {offsets = [0, 32], sizes = [1, 32], strides = [1, 1]} : vector<1x128xf32> to vector<1x32xf32>
    %59 = vector.extract_strided_slice %56 {offsets = [0, 64], sizes = [1, 32], strides = [1, 1]} : vector<1x128xf32> to vector<1x32xf32>
    %60 = vector.extract_strided_slice %56 {offsets = [0, 96], sizes = [1, 32], strides = [1, 1]} : vector<1x128xf32> to vector<1x32xf32>
    %61 = arith.mulf %58, %46 : vector<1x32xf32>
    %62 = arith.mulf %57, %59 : vector<1x32xf32>
    %63 = arith.addf %61, %62 : vector<1x32xf32>
    %64 = math.tanh %63 : vector<1x32xf32>
    %65 = arith.mulf %60, %64 : vector<1x32xf32>
    %c0_38 = arith.constant 0 : index
    %c0_39 = arith.constant 0 : index
    %66 = vector.load %arg14[%c0_38, %c0_39] : memref<8x32xf32, #tpu.memory_space<vmem>>, vector<1x32xf32>
    tpu.vector_store %arg14[%c0_38, %c0_39], %65 {strides = array<i32>} : memref<8x32xf32, #tpu.memory_space<vmem>>, vector<1x32xf32>,
    %67 = vector.extract_strided_slice %44 {offsets = [1, 0], sizes = [1, 128], strides = [1, 1]} : vector<8x128xf32> to vector<1x128xf32>
    %cst_40 = arith.constant dense<0.000000e+00> : vector<1x128xf32>
    %68 = tpu.matmul %65, %39, %cst_40 {dimension_numbers = #tpu.dot_dimension_numbers<[1], [0], [0], [1], [0, 0, 1, 1], [], []>} : vector<1x32xf32>, vector<32x128xf32>, vector<1x128xf32> -> vector<1x128xf32>
    %69 = arith.addf %67, %68 : vector<1x128xf32>
    %70 = arith.negf %69 : vector<1x128xf32>
    %71 = math.exp %70 : vector<1x128xf32>
    %cst_41 = arith.constant 1.000000e+00 : f32
    %72 = vector.broadcast %cst_41 : f32 to vector<1x128xf32>
    %73 = arith.addf %72, %71 : vector<1x128xf32>
    %74 = arith.divf %72, %73 : vector<1x128xf32>
    %75 = math.tanh %69 : vector<1x128xf32>
    %76 = arith.select %37, %75, %74 : vector<1x128xi1>, vector<1x128xf32>
    %77 = vector.extract_strided_slice %76 {offsets = [0, 0], sizes = [1, 32], strides = [1, 1]} : vector<1x128xf32> to vector<1x32xf32>
    %78 = vector.extract_strided_slice %76 {offsets = [0, 32], sizes = [1, 32], strides = [1, 1]} : vector<1x128xf32> to vector<1x32xf32>
    %79 = vector.extract_strided_slice %76 {offsets = [0, 64], sizes = [1, 32], strides = [1, 1]} : vector<1x128xf32> to vector<1x32xf32>
    %80 = vector.extract_strided_slice %76 {offsets = [0, 96], sizes = [1, 32], strides = [1, 1]} : vector<1x128xf32> to vector<1x32xf32>
    %81 = arith.mulf %78, %63 : vector<1x32xf32>
    %82 = arith.mulf %77, %79 : vector<1x32xf32>
    %83 = arith.addf %81, %82 : vector<1x32xf32>
    %84 = math.tanh %83 : vector<1x32xf32>
    %85 = arith.mulf %80, %84 : vector<1x32xf32>
    %c1_42 = arith.constant 1 : index
    %c0_43 = arith.constant 0 : index
    %86 = vector.load %arg14[%c1_42, %c0_43] : memref<8x32xf32, #tpu.memory_space<vmem>>, vector<1x32xf32>
    tpu.vector_store %arg14[%c1_42, %c0_43], %85 {strides = array<i32>} : memref<8x32xf32, #tpu.memory_space<vmem>>, vector<1x32xf32>,
    %87 = vector.extract_strided_slice %44 {offsets = [2, 0], sizes = [1, 128], strides = [1, 1]} : vector<8x128xf32> to vector<1x128xf32>
    %cst_44 = arith.constant dense<0.000000e+00> : vector<1x128xf32>
    %88 = tpu.matmul %85, %39, %cst_44 {dimension_numbers = #tpu.dot_dimension_numbers<[1], [0], [0], [1], [0, 0, 1, 1], [], []>} : vector<1x32xf32>, vector<32x128xf32>, vector<1x128xf32> -> vector<1x128xf32>
    %89 = arith.addf %87, %88 : vector<1x128xf32>
    %90 = arith.negf %89 : vector<1x128xf32>
    %91 = math.exp %90 : vector<1x128xf32>
    %cst_45 = arith.constant 1.000000e+00 : f32
    %92 = vector.broadcast %cst_45 : f32 to vector<1x128xf32>
    %93 = arith.addf %92, %91 : vector<1x128xf32>
    %94 = arith.divf %92, %93 : vector<1x128xf32>
    %95 = math.tanh %89 : vector<1x128xf32>
    %96 = arith.select %37, %95, %94 : vector<1x128xi1>, vector<1x128xf32>
    %97 = vector.extract_strided_slice %96 {offsets = [0, 0], sizes = [1, 32], strides = [1, 1]} : vector<1x128xf32> to vector<1x32xf32>
    %98 = vector.extract_strided_slice %96 {offsets = [0, 32], sizes = [1, 32], strides = [1, 1]} : vector<1x128xf32> to vector<1x32xf32>
    %99 = vector.extract_strided_slice %96 {offsets = [0, 64], sizes = [1, 32], strides = [1, 1]} : vector<1x128xf32> to vector<1x32xf32>
    %100 = vector.extract_strided_slice %96 {offsets = [0, 96], sizes = [1, 32], strides = [1, 1]} : vector<1x128xf32> to vector<1x32xf32>
    %101 = arith.mulf %98, %83 : vector<1x32xf32>
    %102 = arith.mulf %97, %99 : vector<1x32xf32>
    %103 = arith.addf %101, %102 : vector<1x32xf32>
    %104 = math.tanh %103 : vector<1x32xf32>
    %105 = arith.mulf %100, %104 : vector<1x32xf32>
    %c2_46 = arith.constant 2 : index
    %c0_47 = arith.constant 0 : index
    %106 = vector.load %arg14[%c2_46, %c0_47] : memref<8x32xf32, #tpu.memory_space<vmem>>, vector<1x32xf32>
    tpu.vector_store %arg14[%c2_46, %c0_47], %105 {strides = array<i32>} : memref<8x32xf32, #tpu.memory_space<vmem>>, vector<1x32xf32>,
    %107 = vector.extract_strided_slice %44 {offsets = [3, 0], sizes = [1, 128], strides = [1, 1]} : vector<8x128xf32> to vector<1x128xf32>
    %cst_48 = arith.constant dense<0.000000e+00> : vector<1x128xf32>
    %108 = tpu.matmul %105, %39, %cst_48 {dimension_numbers = #tpu.dot_dimension_numbers<[1], [0], [0], [1], [0, 0, 1, 1], [], []>} : vector<1x32xf32>, vector<32x128xf32>, vector<1x128xf32> -> vector<1x128xf32>
    %109 = arith.addf %107, %108 : vector<1x128xf32>
    %110 = arith.negf %109 : vector<1x128xf32>
    %111 = math.exp %110 : vector<1x128xf32>
    %cst_49 = arith.constant 1.000000e+00 : f32
    %112 = vector.broadcast %cst_49 : f32 to vector<1x128xf32>
    %113 = arith.addf %112, %111 : vector<1x128xf32>
    %114 = arith.divf %112, %113 : vector<1x128xf32>
    %115 = math.tanh %109 : vector<1x128xf32>
    %116 = arith.select %37, %115, %114 : vector<1x128xi1>, vector<1x128xf32>
    %117 = vector.extract_strided_slice %116 {offsets = [0, 0], sizes = [1, 32], strides = [1, 1]} : vector<1x128xf32> to vector<1x32xf32>
    %118 = vector.extract_strided_slice %116 {offsets = [0, 32], sizes = [1, 32], strides = [1, 1]} : vector<1x128xf32> to vector<1x32xf32>
    %119 = vector.extract_strided_slice %116 {offsets = [0, 64], sizes = [1, 32], strides = [1, 1]} : vector<1x128xf32> to vector<1x32xf32>
    %120 = vector.extract_strided_slice %116 {offsets = [0, 96], sizes = [1, 32], strides = [1, 1]} : vector<1x128xf32> to vector<1x32xf32>
    %121 = arith.mulf %118, %103 : vector<1x32xf32>
    %122 = arith.mulf %117, %119 : vector<1x32xf32>
    %123 = arith.addf %121, %122 : vector<1x32xf32>
    %124 = math.tanh %123 : vector<1x32xf32>
    %125 = arith.mulf %120, %124 : vector<1x32xf32>
    %c3_50 = arith.constant 3 : index
    %c0_51 = arith.constant 0 : index
    %126 = vector.load %arg14[%c3_50, %c0_51] : memref<8x32xf32, #tpu.memory_space<vmem>>, vector<1x32xf32>
    tpu.vector_store %arg14[%c3_50, %c0_51], %125 {strides = array<i32>} : memref<8x32xf32, #tpu.memory_space<vmem>>, vector<1x32xf32>,
    %127 = vector.extract_strided_slice %44 {offsets = [4, 0], sizes = [1, 128], strides = [1, 1]} : vector<8x128xf32> to vector<1x128xf32>
    %cst_52 = arith.constant dense<0.000000e+00> : vector<1x128xf32>
    %128 = tpu.matmul %125, %39, %cst_52 {dimension_numbers = #tpu.dot_dimension_numbers<[1], [0], [0], [1], [0, 0, 1, 1], [], []>} : vector<1x32xf32>, vector<32x128xf32>, vector<1x128xf32> -> vector<1x128xf32>
    %129 = arith.addf %127, %128 : vector<1x128xf32>
    %130 = arith.negf %129 : vector<1x128xf32>
    %131 = math.exp %130 : vector<1x128xf32>
    %cst_53 = arith.constant 1.000000e+00 : f32
    %132 = vector.broadcast %cst_53 : f32 to vector<1x128xf32>
    %133 = arith.addf %132, %131 : vector<1x128xf32>
    %134 = arith.divf %132, %133 : vector<1x128xf32>
    %135 = math.tanh %129 : vector<1x128xf32>
    %136 = arith.select %37, %135, %134 : vector<1x128xi1>, vector<1x128xf32>
    %137 = vector.extract_strided_slice %136 {offsets = [0, 0], sizes = [1, 32], strides = [1, 1]} : vector<1x128xf32> to vector<1x32xf32>
    %138 = vector.extract_strided_slice %136 {offsets = [0, 32], sizes = [1, 32], strides = [1, 1]} : vector<1x128xf32> to vector<1x32xf32>
    %139 = vector.extract_strided_slice %136 {offsets = [0, 64], sizes = [1, 32], strides = [1, 1]} : vector<1x128xf32> to vector<1x32xf32>
    %140 = vector.extract_strided_slice %136 {offsets = [0, 96], sizes = [1, 32], strides = [1, 1]} : vector<1x128xf32> to vector<1x32xf32>
    %141 = arith.mulf %138, %123 : vector<1x32xf32>
    %142 = arith.mulf %137, %139 : vector<1x32xf32>
    %143 = arith.addf %141, %142 : vector<1x32xf32>
    %144 = math.tanh %143 : vector<1x32xf32>
    %145 = arith.mulf %140, %144 : vector<1x32xf32>
    %c4_54 = arith.constant 4 : index
    %c0_55 = arith.constant 0 : index
    %146 = vector.load %arg14[%c4_54, %c0_55] : memref<8x32xf32, #tpu.memory_space<vmem>>, vector<1x32xf32>
    tpu.vector_store %arg14[%c4_54, %c0_55], %145 {strides = array<i32>} : memref<8x32xf32, #tpu.memory_space<vmem>>, vector<1x32xf32>,
    %147 = vector.extract_strided_slice %44 {offsets = [5, 0], sizes = [1, 128], strides = [1, 1]} : vector<8x128xf32> to vector<1x128xf32>
    %cst_56 = arith.constant dense<0.000000e+00> : vector<1x128xf32>
    %148 = tpu.matmul %145, %39, %cst_56 {dimension_numbers = #tpu.dot_dimension_numbers<[1], [0], [0], [1], [0, 0, 1, 1], [], []>} : vector<1x32xf32>, vector<32x128xf32>, vector<1x128xf32> -> vector<1x128xf32>
    %149 = arith.addf %147, %148 : vector<1x128xf32>
    %150 = arith.negf %149 : vector<1x128xf32>
    %151 = math.exp %150 : vector<1x128xf32>
    %cst_57 = arith.constant 1.000000e+00 : f32
    %152 = vector.broadcast %cst_57 : f32 to vector<1x128xf32>
    %153 = arith.addf %152, %151 : vector<1x128xf32>
    %154 = arith.divf %152, %153 : vector<1x128xf32>
    %155 = math.tanh %149 : vector<1x128xf32>
    %156 = arith.select %37, %155, %154 : vector<1x128xi1>, vector<1x128xf32>
    %157 = vector.extract_strided_slice %156 {offsets = [0, 0], sizes = [1, 32], strides = [1, 1]} : vector<1x128xf32> to vector<1x32xf32>
    %158 = vector.extract_strided_slice %156 {offsets = [0, 32], sizes = [1, 32], strides = [1, 1]} : vector<1x128xf32> to vector<1x32xf32>
    %159 = vector.extract_strided_slice %156 {offsets = [0, 64], sizes = [1, 32], strides = [1, 1]} : vector<1x128xf32> to vector<1x32xf32>
    %160 = vector.extract_strided_slice %156 {offsets = [0, 96], sizes = [1, 32], strides = [1, 1]} : vector<1x128xf32> to vector<1x32xf32>
    %161 = arith.mulf %158, %143 : vector<1x32xf32>
    %162 = arith.mulf %157, %159 : vector<1x32xf32>
    %163 = arith.addf %161, %162 : vector<1x32xf32>
    %164 = math.tanh %163 : vector<1x32xf32>
    %165 = arith.mulf %160, %164 : vector<1x32xf32>
    %c5_58 = arith.constant 5 : index
    %c0_59 = arith.constant 0 : index
    %166 = vector.load %arg14[%c5_58, %c0_59] : memref<8x32xf32, #tpu.memory_space<vmem>>, vector<1x32xf32>
    tpu.vector_store %arg14[%c5_58, %c0_59], %165 {strides = array<i32>} : memref<8x32xf32, #tpu.memory_space<vmem>>, vector<1x32xf32>,
    %167 = vector.extract_strided_slice %44 {offsets = [6, 0], sizes = [1, 128], strides = [1, 1]} : vector<8x128xf32> to vector<1x128xf32>
    %cst_60 = arith.constant dense<0.000000e+00> : vector<1x128xf32>
    %168 = tpu.matmul %165, %39, %cst_60 {dimension_numbers = #tpu.dot_dimension_numbers<[1], [0], [0], [1], [0, 0, 1, 1], [], []>} : vector<1x32xf32>, vector<32x128xf32>, vector<1x128xf32> -> vector<1x128xf32>
    %169 = arith.addf %167, %168 : vector<1x128xf32>
    %170 = arith.negf %169 : vector<1x128xf32>
    %171 = math.exp %170 : vector<1x128xf32>
    %cst_61 = arith.constant 1.000000e+00 : f32
    %172 = vector.broadcast %cst_61 : f32 to vector<1x128xf32>
    %173 = arith.addf %172, %171 : vector<1x128xf32>
    %174 = arith.divf %172, %173 : vector<1x128xf32>
    %175 = math.tanh %169 : vector<1x128xf32>
    %176 = arith.select %37, %175, %174 : vector<1x128xi1>, vector<1x128xf32>
    %177 = vector.extract_strided_slice %176 {offsets = [0, 0], sizes = [1, 32], strides = [1, 1]} : vector<1x128xf32> to vector<1x32xf32>
    %178 = vector.extract_strided_slice %176 {offsets = [0, 32], sizes = [1, 32], strides = [1, 1]} : vector<1x128xf32> to vector<1x32xf32>
    %179 = vector.extract_strided_slice %176 {offsets = [0, 64], sizes = [1, 32], strides = [1, 1]} : vector<1x128xf32> to vector<1x32xf32>
    %180 = vector.extract_strided_slice %176 {offsets = [0, 96], sizes = [1, 32], strides = [1, 1]} : vector<1x128xf32> to vector<1x32xf32>
    %181 = arith.mulf %178, %163 : vector<1x32xf32>
    %182 = arith.mulf %177, %179 : vector<1x32xf32>
    %183 = arith.addf %181, %182 : vector<1x32xf32>
    %184 = math.tanh %183 : vector<1x32xf32>
    %185 = arith.mulf %180, %184 : vector<1x32xf32>
    %c6_62 = arith.constant 6 : index
    %c0_63 = arith.constant 0 : index
    %186 = vector.load %arg14[%c6_62, %c0_63] : memref<8x32xf32, #tpu.memory_space<vmem>>, vector<1x32xf32>
    tpu.vector_store %arg14[%c6_62, %c0_63], %185 {strides = array<i32>} : memref<8x32xf32, #tpu.memory_space<vmem>>, vector<1x32xf32>,
    %187 = vector.extract_strided_slice %44 {offsets = [7, 0], sizes = [1, 128], strides = [1, 1]} : vector<8x128xf32> to vector<1x128xf32>
    %cst_64 = arith.constant dense<0.000000e+00> : vector<1x128xf32>
    %188 = tpu.matmul %185, %39, %cst_64 {dimension_numbers = #tpu.dot_dimension_numbers<[1], [0], [0], [1], [0, 0, 1, 1], [], []>} : vector<1x32xf32>, vector<32x128xf32>, vector<1x128xf32> -> vector<1x128xf32>
    %189 = arith.addf %187, %188 : vector<1x128xf32>
    %190 = arith.negf %189 : vector<1x128xf32>
    %191 = math.exp %190 : vector<1x128xf32>
    %cst_65 = arith.constant 1.000000e+00 : f32
    %192 = vector.broadcast %cst_65 : f32 to vector<1x128xf32>
    %193 = arith.addf %192, %191 : vector<1x128xf32>
    %194 = arith.divf %192, %193 : vector<1x128xf32>
    %195 = math.tanh %189 : vector<1x128xf32>
    %196 = arith.select %37, %195, %194 : vector<1x128xi1>, vector<1x128xf32>
    %197 = vector.extract_strided_slice %196 {offsets = [0, 0], sizes = [1, 32], strides = [1, 1]} : vector<1x128xf32> to vector<1x32xf32>
    %198 = vector.extract_strided_slice %196 {offsets = [0, 32], sizes = [1, 32], strides = [1, 1]} : vector<1x128xf32> to vector<1x32xf32>
    %199 = vector.extract_strided_slice %196 {offsets = [0, 64], sizes = [1, 32], strides = [1, 1]} : vector<1x128xf32> to vector<1x32xf32>
    %200 = vector.extract_strided_slice %196 {offsets = [0, 96], sizes = [1, 32], strides = [1, 1]} : vector<1x128xf32> to vector<1x32xf32>
    %201 = arith.mulf %198, %183 : vector<1x32xf32>
    %202 = arith.mulf %197, %199 : vector<1x32xf32>
    %203 = arith.addf %201, %202 : vector<1x32xf32>
    %204 = math.tanh %203 : vector<1x32xf32>
    %205 = arith.mulf %200, %204 : vector<1x32xf32>
    %c7_66 = arith.constant 7 : index
    %c0_67 = arith.constant 0 : index
    %206 = vector.load %arg14[%c7_66, %c0_67] : memref<8x32xf32, #tpu.memory_space<vmem>>, vector<1x32xf32>
    tpu.vector_store %arg14[%c7_66, %c0_67], %205 {strides = array<i32>} : memref<8x32xf32, #tpu.memory_space<vmem>>, vector<1x32xf32>,
    %c0_68 = arith.constant 0 : index
    %c0_69 = arith.constant 0 : index
    %207 = vector.load %arg14[%c0_68, %c0_69] : memref<8x32xf32, #tpu.memory_space<vmem>>, vector<8x32xf32>
    %c0_70 = arith.constant 0 : index
    %c0_71 = arith.constant 0 : index
    %208 = vector.load %arg6[%c0_70, %c0_71] : memref<32x128xf32, #tpu.memory_space<vmem>>, vector<32x128xf32>
    %c0_72 = arith.constant 0 : index
    %c0_73 = arith.constant 0 : index
    %209 = vector.load %arg5[%c0_72, %c0_73] : memref<32x128xf32, #tpu.memory_space<vmem>>, vector<32x128xf32>
    %cst_74 = arith.constant dense<0.000000e+00> : vector<8x128xf32>
    %210 = tpu.matmul %207, %209, %cst_74 {dimension_numbers = #tpu.dot_dimension_numbers<[1], [0], [0], [1], [0, 0, 1, 1], [], []>} : vector<8x32xf32>, vector<32x128xf32>, vector<8x128xf32> -> vector<8x128xf32>
    %c0_75 = arith.constant 0 : index
    %c0_76 = arith.constant 0 : index
    %211 = vector.load %arg7[%c0_75, %c0_76] : memref<1x128xf32, #tpu.memory_space<vmem>>, vector<1x128xf32>
    %212 = vector.broadcast %211 : vector<1x128xf32> to vector<8x128xf32>
    %213 = arith.addf %210, %212 : vector<8x128xf32>
    %c1_77 = arith.constant 1 : index
    %c0_78 = arith.constant 0 : index
    %214 = vector.load %arg8[%c1_77, %c0_78] : memref<2x32xf32, #tpu.memory_space<vmem>>, vector<1x32xf32>
    %c1_79 = arith.constant 1 : index
    %c0_80 = arith.constant 0 : index
    %215 = vector.load %arg9[%c1_79, %c0_80] : memref<2x32xf32, #tpu.memory_space<vmem>>, vector<1x32xf32>
    %216 = vector.extract_strided_slice %213 {offsets = [0, 0], sizes = [1, 128], strides = [1, 1]} : vector<8x128xf32> to vector<1x128xf32>
    %cst_81 = arith.constant dense<0.000000e+00> : vector<1x128xf32>
    %217 = tpu.matmul %214, %208, %cst_81 {dimension_numbers = #tpu.dot_dimension_numbers<[1], [0], [0], [1], [0, 0, 1, 1], [], []>} : vector<1x32xf32>, vector<32x128xf32>, vector<1x128xf32> -> vector<1x128xf32>
    %218 = arith.addf %216, %217 : vector<1x128xf32>
    %219 = arith.negf %218 : vector<1x128xf32>
    %220 = math.exp %219 : vector<1x128xf32>
    %cst_82 = arith.constant 1.000000e+00 : f32
    %221 = vector.broadcast %cst_82 : f32 to vector<1x128xf32>
    %222 = arith.addf %221, %220 : vector<1x128xf32>
    %223 = arith.divf %221, %222 : vector<1x128xf32>
    %224 = math.tanh %218 : vector<1x128xf32>
    %225 = arith.select %37, %224, %223 : vector<1x128xi1>, vector<1x128xf32>
    %226 = vector.extract_strided_slice %225 {offsets = [0, 0], sizes = [1, 32], strides = [1, 1]} : vector<1x128xf32> to vector<1x32xf32>
    %227 = vector.extract_strided_slice %225 {offsets = [0, 32], sizes = [1, 32], strides = [1, 1]} : vector<1x128xf32> to vector<1x32xf32>
    %228 = vector.extract_strided_slice %225 {offsets = [0, 64], sizes = [1, 32], strides = [1, 1]} : vector<1x128xf32> to vector<1x32xf32>
    %229 = vector.extract_strided_slice %225 {offsets = [0, 96], sizes = [1, 32], strides = [1, 1]} : vector<1x128xf32> to vector<1x32xf32>
    %230 = arith.mulf %227, %215 : vector<1x32xf32>
    %231 = arith.mulf %226, %228 : vector<1x32xf32>
    %232 = arith.addf %230, %231 : vector<1x32xf32>
    %233 = math.tanh %232 : vector<1x32xf32>
    %234 = arith.mulf %229, %233 : vector<1x32xf32>
    %235 = vector.extract_strided_slice %213 {offsets = [1, 0], sizes = [1, 128], strides = [1, 1]} : vector<8x128xf32> to vector<1x128xf32>
    %cst_83 = arith.constant dense<0.000000e+00> : vector<1x128xf32>
    %236 = tpu.matmul %234, %208, %cst_83 {dimension_numbers = #tpu.dot_dimension_numbers<[1], [0], [0], [1], [0, 0, 1, 1], [], []>} : vector<1x32xf32>, vector<32x128xf32>, vector<1x128xf32> -> vector<1x128xf32>
    %237 = arith.addf %235, %236 : vector<1x128xf32>
    %238 = arith.negf %237 : vector<1x128xf32>
    %239 = math.exp %238 : vector<1x128xf32>
    %cst_84 = arith.constant 1.000000e+00 : f32
    %240 = vector.broadcast %cst_84 : f32 to vector<1x128xf32>
    %241 = arith.addf %240, %239 : vector<1x128xf32>
    %242 = arith.divf %240, %241 : vector<1x128xf32>
    %243 = math.tanh %237 : vector<1x128xf32>
    %244 = arith.select %37, %243, %242 : vector<1x128xi1>, vector<1x128xf32>
    %245 = vector.extract_strided_slice %244 {offsets = [0, 0], sizes = [1, 32], strides = [1, 1]} : vector<1x128xf32> to vector<1x32xf32>
    %246 = vector.extract_strided_slice %244 {offsets = [0, 32], sizes = [1, 32], strides = [1, 1]} : vector<1x128xf32> to vector<1x32xf32>
    %247 = vector.extract_strided_slice %244 {offsets = [0, 64], sizes = [1, 32], strides = [1, 1]} : vector<1x128xf32> to vector<1x32xf32>
    %248 = vector.extract_strided_slice %244 {offsets = [0, 96], sizes = [1, 32], strides = [1, 1]} : vector<1x128xf32> to vector<1x32xf32>
    %249 = arith.mulf %246, %232 : vector<1x32xf32>
    %250 = arith.mulf %245, %247 : vector<1x32xf32>
    %251 = arith.addf %249, %250 : vector<1x32xf32>
    %252 = math.tanh %251 : vector<1x32xf32>
    %253 = arith.mulf %248, %252 : vector<1x32xf32>
    %254 = vector.extract_strided_slice %213 {offsets = [2, 0], sizes = [1, 128], strides = [1, 1]} : vector<8x128xf32> to vector<1x128xf32>
    %cst_85 = arith.constant dense<0.000000e+00> : vector<1x128xf32>
    %255 = tpu.matmul %253, %208, %cst_85 {dimension_numbers = #tpu.dot_dimension_numbers<[1], [0], [0], [1], [0, 0, 1, 1], [], []>} : vector<1x32xf32>, vector<32x128xf32>, vector<1x128xf32> -> vector<1x128xf32>
    %256 = arith.addf %254, %255 : vector<1x128xf32>
    %257 = arith.negf %256 : vector<1x128xf32>
    %258 = math.exp %257 : vector<1x128xf32>
    %cst_86 = arith.constant 1.000000e+00 : f32
    %259 = vector.broadcast %cst_86 : f32 to vector<1x128xf32>
    %260 = arith.addf %259, %258 : vector<1x128xf32>
    %261 = arith.divf %259, %260 : vector<1x128xf32>
    %262 = math.tanh %256 : vector<1x128xf32>
    %263 = arith.select %37, %262, %261 : vector<1x128xi1>, vector<1x128xf32>
    %264 = vector.extract_strided_slice %263 {offsets = [0, 0], sizes = [1, 32], strides = [1, 1]} : vector<1x128xf32> to vector<1x32xf32>
    %265 = vector.extract_strided_slice %263 {offsets = [0, 32], sizes = [1, 32], strides = [1, 1]} : vector<1x128xf32> to vector<1x32xf32>
    %266 = vector.extract_strided_slice %263 {offsets = [0, 64], sizes = [1, 32], strides = [1, 1]} : vector<1x128xf32> to vector<1x32xf32>
    %267 = vector.extract_strided_slice %263 {offsets = [0, 96], sizes = [1, 32], strides = [1, 1]} : vector<1x128xf32> to vector<1x32xf32>
    %268 = arith.mulf %265, %251 : vector<1x32xf32>
    %269 = arith.mulf %264, %266 : vector<1x32xf32>
    %270 = arith.addf %268, %269 : vector<1x32xf32>
    %271 = math.tanh %270 : vector<1x32xf32>
    %272 = arith.mulf %267, %271 : vector<1x32xf32>
    %273 = vector.extract_strided_slice %213 {offsets = [3, 0], sizes = [1, 128], strides = [1, 1]} : vector<8x128xf32> to vector<1x128xf32>
    %cst_87 = arith.constant dense<0.000000e+00> : vector<1x128xf32>
    %274 = tpu.matmul %272, %208, %cst_87 {dimension_numbers = #tpu.dot_dimension_numbers<[1], [0], [0], [1], [0, 0, 1, 1], [], []>} : vector<1x32xf32>, vector<32x128xf32>, vector<1x128xf32> -> vector<1x128xf32>
    %275 = arith.addf %273, %274 : vector<1x128xf32>
    %276 = arith.negf %275 : vector<1x128xf32>
    %277 = math.exp %276 : vector<1x128xf32>
    %cst_88 = arith.constant 1.000000e+00 : f32
    %278 = vector.broadcast %cst_88 : f32 to vector<1x128xf32>
    %279 = arith.addf %278, %277 : vector<1x128xf32>
    %280 = arith.divf %278, %279 : vector<1x128xf32>
    %281 = math.tanh %275 : vector<1x128xf32>
    %282 = arith.select %37, %281, %280 : vector<1x128xi1>, vector<1x128xf32>
    %283 = vector.extract_strided_slice %282 {offsets = [0, 0], sizes = [1, 32], strides = [1, 1]} : vector<1x128xf32> to vector<1x32xf32>
    %284 = vector.extract_strided_slice %282 {offsets = [0, 32], sizes = [1, 32], strides = [1, 1]} : vector<1x128xf32> to vector<1x32xf32>
    %285 = vector.extract_strided_slice %282 {offsets = [0, 64], sizes = [1, 32], strides = [1, 1]} : vector<1x128xf32> to vector<1x32xf32>
    %286 = vector.extract_strided_slice %282 {offsets = [0, 96], sizes = [1, 32], strides = [1, 1]} : vector<1x128xf32> to vector<1x32xf32>
    %287 = arith.mulf %284, %270 : vector<1x32xf32>
    %288 = arith.mulf %283, %285 : vector<1x32xf32>
    %289 = arith.addf %287, %288 : vector<1x32xf32>
    %290 = math.tanh %289 : vector<1x32xf32>
    %291 = arith.mulf %286, %290 : vector<1x32xf32>
    %292 = vector.extract_strided_slice %213 {offsets = [4, 0], sizes = [1, 128], strides = [1, 1]} : vector<8x128xf32> to vector<1x128xf32>
    %cst_89 = arith.constant dense<0.000000e+00> : vector<1x128xf32>
    %293 = tpu.matmul %291, %208, %cst_89 {dimension_numbers = #tpu.dot_dimension_numbers<[1], [0], [0], [1], [0, 0, 1, 1], [], []>} : vector<1x32xf32>, vector<32x128xf32>, vector<1x128xf32> -> vector<1x128xf32>
    %294 = arith.addf %292, %293 : vector<1x128xf32>
    %295 = arith.negf %294 : vector<1x128xf32>
    %296 = math.exp %295 : vector<1x128xf32>
    %cst_90 = arith.constant 1.000000e+00 : f32
    %297 = vector.broadcast %cst_90 : f32 to vector<1x128xf32>
    %298 = arith.addf %297, %296 : vector<1x128xf32>
    %299 = arith.divf %297, %298 : vector<1x128xf32>
    %300 = math.tanh %294 : vector<1x128xf32>
    %301 = arith.select %37, %300, %299 : vector<1x128xi1>, vector<1x128xf32>
    %302 = vector.extract_strided_slice %301 {offsets = [0, 0], sizes = [1, 32], strides = [1, 1]} : vector<1x128xf32> to vector<1x32xf32>
    %303 = vector.extract_strided_slice %301 {offsets = [0, 32], sizes = [1, 32], strides = [1, 1]} : vector<1x128xf32> to vector<1x32xf32>
    %304 = vector.extract_strided_slice %301 {offsets = [0, 64], sizes = [1, 32], strides = [1, 1]} : vector<1x128xf32> to vector<1x32xf32>
    %305 = vector.extract_strided_slice %301 {offsets = [0, 96], sizes = [1, 32], strides = [1, 1]} : vector<1x128xf32> to vector<1x32xf32>
    %306 = arith.mulf %303, %289 : vector<1x32xf32>
    %307 = arith.mulf %302, %304 : vector<1x32xf32>
    %308 = arith.addf %306, %307 : vector<1x32xf32>
    %309 = math.tanh %308 : vector<1x32xf32>
    %310 = arith.mulf %305, %309 : vector<1x32xf32>
    %311 = vector.extract_strided_slice %213 {offsets = [5, 0], sizes = [1, 128], strides = [1, 1]} : vector<8x128xf32> to vector<1x128xf32>
    %cst_91 = arith.constant dense<0.000000e+00> : vector<1x128xf32>
    %312 = tpu.matmul %310, %208, %cst_91 {dimension_numbers = #tpu.dot_dimension_numbers<[1], [0], [0], [1], [0, 0, 1, 1], [], []>} : vector<1x32xf32>, vector<32x128xf32>, vector<1x128xf32> -> vector<1x128xf32>
    %313 = arith.addf %311, %312 : vector<1x128xf32>
    %314 = arith.negf %313 : vector<1x128xf32>
    %315 = math.exp %314 : vector<1x128xf32>
    %cst_92 = arith.constant 1.000000e+00 : f32
    %316 = vector.broadcast %cst_92 : f32 to vector<1x128xf32>
    %317 = arith.addf %316, %315 : vector<1x128xf32>
    %318 = arith.divf %316, %317 : vector<1x128xf32>
    %319 = math.tanh %313 : vector<1x128xf32>
    %320 = arith.select %37, %319, %318 : vector<1x128xi1>, vector<1x128xf32>
    %321 = vector.extract_strided_slice %320 {offsets = [0, 0], sizes = [1, 32], strides = [1, 1]} : vector<1x128xf32> to vector<1x32xf32>
    %322 = vector.extract_strided_slice %320 {offsets = [0, 32], sizes = [1, 32], strides = [1, 1]} : vector<1x128xf32> to vector<1x32xf32>
    %323 = vector.extract_strided_slice %320 {offsets = [0, 64], sizes = [1, 32], strides = [1, 1]} : vector<1x128xf32> to vector<1x32xf32>
    %324 = vector.extract_strided_slice %320 {offsets = [0, 96], sizes = [1, 32], strides = [1, 1]} : vector<1x128xf32> to vector<1x32xf32>
    %325 = arith.mulf %322, %308 : vector<1x32xf32>
    %326 = arith.mulf %321, %323 : vector<1x32xf32>
    %327 = arith.addf %325, %326 : vector<1x32xf32>
    %328 = math.tanh %327 : vector<1x32xf32>
    %329 = arith.mulf %324, %328 : vector<1x32xf32>
    %330 = vector.extract_strided_slice %213 {offsets = [6, 0], sizes = [1, 128], strides = [1, 1]} : vector<8x128xf32> to vector<1x128xf32>
    %cst_93 = arith.constant dense<0.000000e+00> : vector<1x128xf32>
    %331 = tpu.matmul %329, %208, %cst_93 {dimension_numbers = #tpu.dot_dimension_numbers<[1], [0], [0], [1], [0, 0, 1, 1], [], []>} : vector<1x32xf32>, vector<32x128xf32>, vector<1x128xf32> -> vector<1x128xf32>
    %332 = arith.addf %330, %331 : vector<1x128xf32>
    %333 = arith.negf %332 : vector<1x128xf32>
    %334 = math.exp %333 : vector<1x128xf32>
    %cst_94 = arith.constant 1.000000e+00 : f32
    %335 = vector.broadcast %cst_94 : f32 to vector<1x128xf32>
    %336 = arith.addf %335, %334 : vector<1x128xf32>
    %337 = arith.divf %335, %336 : vector<1x128xf32>
    %338 = math.tanh %332 : vector<1x128xf32>
    %339 = arith.select %37, %338, %337 : vector<1x128xi1>, vector<1x128xf32>
    %340 = vector.extract_strided_slice %339 {offsets = [0, 0], sizes = [1, 32], strides = [1, 1]} : vector<1x128xf32> to vector<1x32xf32>
    %341 = vector.extract_strided_slice %339 {offsets = [0, 32], sizes = [1, 32], strides = [1, 1]} : vector<1x128xf32> to vector<1x32xf32>
    %342 = vector.extract_strided_slice %339 {offsets = [0, 64], sizes = [1, 32], strides = [1, 1]} : vector<1x128xf32> to vector<1x32xf32>
    %343 = vector.extract_strided_slice %339 {offsets = [0, 96], sizes = [1, 32], strides = [1, 1]} : vector<1x128xf32> to vector<1x32xf32>
    %344 = arith.mulf %341, %327 : vector<1x32xf32>
    %345 = arith.mulf %340, %342 : vector<1x32xf32>
    %346 = arith.addf %344, %345 : vector<1x32xf32>
    %347 = math.tanh %346 : vector<1x32xf32>
    %348 = arith.mulf %343, %347 : vector<1x32xf32>
    %349 = vector.extract_strided_slice %213 {offsets = [7, 0], sizes = [1, 128], strides = [1, 1]} : vector<8x128xf32> to vector<1x128xf32>
    %cst_95 = arith.constant dense<0.000000e+00> : vector<1x128xf32>
    %350 = tpu.matmul %348, %208, %cst_95 {dimension_numbers = #tpu.dot_dimension_numbers<[1], [0], [0], [1], [0, 0, 1, 1], [], []>} : vector<1x32xf32>, vector<32x128xf32>, vector<1x128xf32> -> vector<1x128xf32>
    %351 = arith.addf %349, %350 : vector<1x128xf32>
    %352 = arith.negf %351 : vector<1x128xf32>
    %353 = math.exp %352 : vector<1x128xf32>
    %cst_96 = arith.constant 1.000000e+00 : f32
    %354 = vector.broadcast %cst_96 : f32 to vector<1x128xf32>
    %355 = arith.addf %354, %353 : vector<1x128xf32>
    %356 = arith.divf %354, %355 : vector<1x128xf32>
    %357 = math.tanh %351 : vector<1x128xf32>
    %358 = arith.select %37, %357, %356 : vector<1x128xi1>, vector<1x128xf32>
    %359 = vector.extract_strided_slice %358 {offsets = [0, 0], sizes = [1, 32], strides = [1, 1]} : vector<1x128xf32> to vector<1x32xf32>
    %360 = vector.extract_strided_slice %358 {offsets = [0, 32], sizes = [1, 32], strides = [1, 1]} : vector<1x128xf32> to vector<1x32xf32>
    %361 = vector.extract_strided_slice %358 {offsets = [0, 64], sizes = [1, 32], strides = [1, 1]} : vector<1x128xf32> to vector<1x32xf32>
    %362 = vector.extract_strided_slice %358 {offsets = [0, 96], sizes = [1, 32], strides = [1, 1]} : vector<1x128xf32> to vector<1x32xf32>
    %363 = arith.mulf %360, %346 : vector<1x32xf32>
    %364 = arith.mulf %359, %361 : vector<1x32xf32>
    %365 = arith.addf %363, %364 : vector<1x32xf32>
    %366 = math.tanh %365 : vector<1x32xf32>
    %367 = arith.mulf %362, %366 : vector<1x32xf32>
    %c0_97 = arith.constant 0 : index
    %c0_98 = arith.constant 0 : index
    %368 = vector.load %arg10[%c0_97, %c0_98] : memref<32x5xf32, #tpu.memory_space<vmem>>, vector<32x5xf32>
    %cst_99 = arith.constant dense<0.000000e+00> : vector<1x5xf32>
    %369 = tpu.matmul %367, %368, %cst_99 {dimension_numbers = #tpu.dot_dimension_numbers<[1], [0], [0], [1], [0, 0, 1, 1], [], []>} : vector<1x32xf32>, vector<32x5xf32>, vector<1x5xf32> -> vector<1x5xf32>
    %c0_100 = arith.constant 0 : index
    %c0_101 = arith.constant 0 : index
    %370 = vector.load %arg11[%c0_100, %c0_101] : memref<1x5xf32, #tpu.memory_space<vmem>>, vector<1x5xf32>
    %371 = arith.addf %369, %370 : vector<1x5xf32>
    %cst_102 = arith.constant dense<0xFF800000> : vector<1xf32>
    %372 = vector.multi_reduction <maximumf>, %371, %cst_102 [1] : vector<1x5xf32> to vector<1xf32>
    %373 = vector.shape_cast %372 : vector<1xf32> to vector<1x1xf32>
    %374 = vector.broadcast %373 : vector<1x1xf32> to vector<1x5xf32>
    %375 = arith.subf %371, %374 : vector<1x5xf32>
    %376 = math.exp %375 : vector<1x5xf32>
    %cst_103 = arith.constant dense<0.000000e+00> : vector<1xf32>
    %377 = vector.multi_reduction <add>, %376, %cst_103 [1] : vector<1x5xf32> to vector<1xf32>
    %378 = vector.shape_cast %377 : vector<1xf32> to vector<1x1xf32>
    %379 = math.log %378 : vector<1x1xf32>
    %380 = vector.broadcast %379 : vector<1x1xf32> to vector<1x5xf32>
    %381 = arith.subf %375, %380 : vector<1x5xf32>
    %c0_104 = arith.constant 0 : index
    %c0_105 = arith.constant 0 : index
    %382 = vector.load %arg12[%c0_104, %c0_105] : memref<1x5xf32, #tpu.memory_space<vmem>>, vector<1x5xf32>
    tpu.vector_store %arg12[%c0_104, %c0_105], %381 {strides = array<i32>} : memref<1x5xf32, #tpu.memory_space<vmem>>, vector<1x5xf32>,
    return
  }
}

</mosaic_0001>

<bundles_post_ra>
// kernel: tpu_custom_call.1
= control target key start
LH: loop header
LB: loop body
LE: loop exit
PB: predicated region body
PF: predicated region fallthrough
CT: control target
= control target key end

     0   :  { %17 = vsyncpa [#allocation7], 0  ;;  %s3377_s0 = inlined_call_operand.vmem [shape: s32[8], index: 0, kind: input, shape index: {}]   ;;  %s3378_s1 = inlined_call_operand.vmem [shape: f32[30,32], index: 1, kind: input, shape index: {}]   ;;  %s3379_s2 = inlined_call_operand.hbm [shape: f32[32,128], index: 2, kind: input, shape index: {}]   ;;  %s3380_s3 = inlined_call_operand.hbm [shape: f32[32,128], index: 3, kind: input, shape index: {}]   ;;  %s3381_s4 = inlined_call_operand.vmem [shape: f32[1,128], index: 4, kind: input, shape index: {}]   ;;  %s3382_s5 = inlined_call_operand.hbm [shape: f32[32,128], index: 5, kind: input, shape index: {}]   ;;  %s3383_s6 = inlined_call_operand.hbm [shape: f32[32,128], index: 6, kind: input, shape index: {}]   ;;  %s3384_s7 = inlined_call_operand.vmem [shape: f32[1,128], index: 7, kind: input, shape index: {}]   ;;  %s3385_s8 = inlined_call_operand.vmem [shape: f32[2,32], index: 8, kind: input, shape index: {}]   ;;  %s3386_s9 = inlined_call_operand.vmem [shape: f32[2,32], index: 9, kind: input, shape index: {}]   ;;  %s3387_s10 = inlined_call_operand.vmem [shape: f32[32,5], index: 10, kind: input, shape index: {}]   ;;  %s3388_s11 = inlined_call_operand.vmem [shape: f32[1,5], index: 11, kind: input, shape index: {}]   ;;  %s3389_s12 = inlined_call_operand.hbm [shape: f32[1,5], index: 12, kind: output, shape index: {}]  }
   0x1   :  { %18 = vsyncpa [#allocation5], 0 }
   0x2   :  { %19 = vsyncpa [#allocation10], 0 }
   0x3   :  { %20 = vsyncpa [#allocation13], 0 }
   0x4   :  { %21 = vsyncpa [#allocation6], 0  ;;  %s28_s23 = sshll.u32 %s3377_s0, 4  ;;  %s2820_s24 = smov [#allocation9]   ;;  %s29_s23 = int_to_ptr.vmem [resolvable:$true] %s28_s23 }
   0x5   :  { %s51_s25 = sshll.u32 %s2820_s24, 4  ;;  %s52_s25 = int_to_ptr.vmem [resolvable:$true] %s51_s25 }
   0x6   :  { %s2706_s26 = scalar_lea.vmem %s52_s25, 512  ;;  %p2711_p1 = scmp.lt.s32.totalorder %s52_s25, %s52_s25 }
   0x7   :  { %p2707_p0 = scmp.ne.s32.totalorder %s52_s25, %s2706_s26  ;;  %p2712_p2 = scmp.lt.s32.totalorder %s2706_s26, %s2706_s26 }
   0x9   :  { %p2713_p3 = por %p2712_p2, %p2711_p1 }
   0xb   :  { %p2714_p4 = pnand %p2713_p3, %p2707_p0 }
   0xd   :  { %2717 = shalt.err (!%p2714_p4)
}
   0xe   :  { %s2821_s27 = smov 128   ;;  %s2822_s28 = smov 8  }
   0xf   :  { %57 = dma.hbm_to_vmem [thread:$0]  %s3380_s3, 512, %s52_s25, [#allocation10], %s2821_s27, %s2821_s27, %s2822_s28  }
  0x10   :  { %s2718_s0 = scalar_lea.vmem %s29_s23, 16  ;;  %p2723_p6 = scmp.lt.s32.totalorder %s29_s23, %s29_s23 }
  0x11   :  { %p2719_p5 = scmp.ne.s32.totalorder %s29_s23, %s2718_s0  ;;  %p2724_p7 = scmp.lt.s32.totalorder %s2718_s0, %s2718_s0 }
  0x13   :  { %p2725_p8 = por %p2724_p7, %p2723_p6 }
  0x15   :  { %p2726_p9 = pnand %p2725_p8, %p2719_p5 }
  0x17   :  { %2729 = shalt.err (!%p2726_p9)
}
  0x18   :  { %s2823_s13 = smov [#allocation4]   ;;  %s2824_s14 = smov [#allocation8]  }
  0x19   :  { %31 = dma.vmem_to_smem %s29_s23, 16, %s2823_s13, [#allocation7]  }
  0x1a   :  { %s39_s15 = sshll.u32 %s2824_s14, 4  ;;  %s2825_s16 = smov [#allocation11]   ;;  %s40_s15 = int_to_ptr.vmem [resolvable:$true] %s39_s15 }
  0x1b   :  { %s65_s17 = sshll.u32 %s2825_s16, 4  ;;  %s2738_s18 = scalar_lea.vmem %s40_s15, 512  ;;  %s66_s17 = int_to_ptr.vmem [resolvable:$true] %s65_s17 }
  0x1c   :  { %p2739_p10 = scmp.ne.s32.totalorder %s40_s15, %s2738_s18  ;;  %p2743_p11 = scmp.lt.s32.totalorder %s40_s15, %s40_s15 }
  0x1d   :  { %p2744_p12 = scmp.lt.s32.totalorder %s2738_s18, %s2738_s18 }
  0x1f   :  { %p2745_p13 = por %p2744_p12, %p2743_p11 }
  0x21   :  { %p2746_p0 = pnand %p2745_p13, %p2739_p10 }
  0x23   :  { %2749 = shalt.err (!%p2746_p0)
}
  0x24   :  { %45 = dma.hbm_to_vmem [thread:$0]  %s3379_s2, 512, %s40_s15, [#allocation5], %s2821_s27, %s2821_s27, %s2822_s28  }
  0x25   :  { %s2758_s20 = scalar_lea.vmem %s66_s17, 512  ;;  %p2763_p2 = scmp.lt.s32.totalorder %s66_s17, %s66_s17 }
  0x26   :  { %p2759_p1 = scmp.ne.s32.totalorder %s66_s17, %s2758_s20  ;;  %p2764_p3 = scmp.lt.s32.totalorder %s2758_s20, %s2758_s20 }
  0x28   :  { %p2765_p4 = por %p2764_p3, %p2763_p2 }
  0x2a   :  { %p2766_p5 = pnand %p2765_p4, %p2759_p1 }
  0x2c   :  { %2769 = shalt.err (!%p2766_p5)
}
  0x2d   :  { %71 = dma.hbm_to_vmem [thread:$0]  %s3382_s5, 512, %s66_s17, [#allocation10], %s2821_s27, %s2821_s27, %s2822_s28  }
  0x2e   :  { %s2826_s23 = smov [#allocation12]  }
  0x2f   :  { %s77_s24 = sshll.u32 %s2826_s23, 4  ;;  %s78_s24 = int_to_ptr.vmem [resolvable:$true] %s77_s24 }
  0x30   :  { %s2778_s25 = scalar_lea.vmem %s78_s24, 512  ;;  %p2783_p7 = scmp.lt.s32.totalorder %s78_s24, %s78_s24 }
  0x31   :  { %p2779_p6 = scmp.ne.s32.totalorder %s78_s24, %s2778_s25  ;;  %p2784_p8 = scmp.lt.s32.totalorder %s2778_s25, %s2778_s25 }
  0x33   :  { %p2785_p9 = por %p2784_p8, %p2783_p7 }
  0x35   :  { %p2786_p10 = pnand %p2785_p9, %p2779_p6 }
  0x37   :  { %2789 = shalt.err (!%p2786_p10)
}
  0x38   :  { %83 = dma.hbm_to_vmem [thread:$0]  %s3383_s6, 512, %s78_s24, [#allocation13], %s2821_s27, %s2821_s27, %s2822_s28  }
  0x39   :  { %2810 = dma.done.wait [#allocation7], 16  }
  0x3a   :  { %2811 = vsyncadd [#allocation7], 4294967280 }
  0x3b   :  { %2812 = dma.done.wait [#allocation5], 512  }
  0x3c   :  { %2813 = vsyncadd [#allocation5], 4294966784 }
  0x3d   :  { %2814 = dma.done.wait [#allocation10], 1024  }
  0x3e   :  { %2815 = vsyncadd [#allocation10], 4294966272 }
  0x3f   :  { %2816 = dma.done.wait [#allocation13], 512  }
  0x40   :  { %2817 = vsyncadd [#allocation13], 4294966784 }
  0x41   :  { %109 = sfence }
  0x42   :  { %v156_v0 = vld [vmem:[#allocation8 + $0x18] sm:$0xff]  ;;  %v2827_v2 = vmov 0.0   ;;  %v155_v3 = vld [vmem:[#allocation8 + $0x10] sm:$0xff]  ;;  %s2930_s5 = sld [smem:[#allocation4]]  ;;  %v154_v5 = vld [vmem:[#allocation8 + $0x8] sm:$0xff]  ;;  %vm113_vm0 = vcmask 253952   ;;  %v143_v29 = vlaneseq }
  0x43   :  { %v2924_v1 = vld [vmem:[#allocation9 + $0x18] sm:$0xff]  ;;  %2345 = vmatprep.subr.mxu0 %v2827_v2  ;;  %2356 = vmatprep.subr.mxu1 %v2827_v2  ;;  %v2928_v4 = vld [vmem:[#allocation9 + $0x10] sm:$0xff]  ;;  %s2933_s6 = sld [smem:[#allocation4 + $0x1]]  ;;  %v2937_v6 = vld [vmem:[#allocation9 + $0x8] sm:$0xff]  ;;  %vm164_vm1 = vcmask 261120   ;;  %vm2828_vm2 = vmmov 0  }
  0x44   :  { %2346 = vmatpush3.msra.mxu0 %v156_v0  ;;  %2357 = vmatpush3.msra.mxu1 %v2924_v1  ;;  %s2939_s27 = sld [smem:[#allocation4 + $0x2]]  ;;  %v153_v7 = vld [vmem:[#allocation8] sm:$0xff]  ;;  %v238_v9 = vld [vmem:[%s3385_s8] sm:$0x1]  ;;  %v144_v30 = vand.u32 127, %v143_v29  ;;  %vm456_vm6 = vcmask 254977  }
  0x45   :  { %2347 = vmatprep.subr.mxu0 %v2827_v2  ;;  %2358 = vmatprep.subr.mxu1 %v2827_v2  ;;  %s2942_s28 = sld [smem:[#allocation4 + $0x3]]  ;;  %v2949_v8 = vld [vmem:[#allocation9] sm:$0xff]  ;;  %v2213_v21 = vld [vmem:[%s3381_s4] ss:$0 sm:$0xff]  ;;  %s2829_s4 = smov 64   ;;  %vm682_vm7 = vcmask 257027  }
  0x46   :  { %2348 = vmatpush3.msra.mxu0 %v155_v3  ;;  %2359 = vmatpush3.msra.mxu1 %v2928_v4  ;;  %s2946_s29 = sld [smem:[#allocation4 + $0x4]]  ;;  %vm145_vm3 = vcmp.ge.s32.totalorder %v144_v30, 64  ;;  %vm146_vm4 = vcmp.lt.s32.totalorder %v144_v30, 96  ;;  %v239_v35 = vld [vmem:[%s3386_s9] sm:$0x1]  ;;  %vm908_vm8 = vcmask 259077  }
  0x47   :  { %2349 = vmatprep.subr.mxu0 %v2827_v2  ;;  %2360 = vmatprep.subr.mxu1 %v2827_v2  ;;  %s2951_s30 = sld [smem:[#allocation4 + $0x5]]  ;;  %vm3037_vm5 = vmand %vm145_vm3, %vm146_vm4  ;;  %vm569_vm9 = vcmask 256002   ;;  %vm795_vm10 = vcmask 258052   ;;  %vm1021_vm11 = vcmask 260102   ;;  %vm1134_vm12 = vcmask 261127   ;;  %v2087_v31 = vld [vmem:[%s3387_s10 + $0x10] sm:$0xff] }
  0x48   :  { %2350 = vmatpush3.msra.mxu0 %v154_v5  ;;  %2361 = vmatpush3.msra.mxu1 %v2937_v6  ;;  %s111_s14 = scalar_lea.vmem %s3378_s1, %s2930_s5  ;;  %s2959_s15 = sld [smem:[#allocation4 + $0x6]]  ;;  %vm2166_vm13 = vcmask 32768  }
  0x49   :  { %2351 = vmatprep.subr.mxu0 %v2827_v2  ;;  %2362 = vmatprep.subr.mxu1 %v2827_v2  ;;  %v112_v10 = vld [vmem:[%s111_s14] sm:$0x1]  ;;  %s116_s19 = scalar_lea.vmem %s3378_s1, %s2933_s6  ;;  %s2970_s20 = sld [smem:[#allocation4 + $0x7]] }
  0x4a   :  { %2352 = vmatpush3.msra.mxu0 %v153_v7  ;;  %2353 = vmatprep.mubr.msk.f32.mxu0 %vm2828_vm2, %v2827_v2  ;;  %114 = vst.msk [vmem:[#allocation2] sm:$0x1] %vm113_vm0, %v112_v10  ;;  %v117_v11 = vld [vmem:[%s116_s19] sm:$0x1]  ;;  %s120_s23 = scalar_lea.vmem %s3378_s1, %s2939_s27  ;;  %s2830_s19 = smov 32  }
  0x4b   :  { %2363 = vmatpush3.msra.mxu1 %v2949_v8  ;;  %2364 = vmatprep.mubr.msk.f32.mxu1 %vm2828_vm2, %v2827_v2  ;;  %118 = vst.msk [vmem:[#allocation2 + $0x1] sm:$0x1] %vm113_vm0, %v117_v11  ;;  %v121_v12 = vld [vmem:[%s120_s23] sm:$0x1]  ;;  %s124_s2 = scalar_lea.vmem %s3378_s1, %s2942_s28 }
  0x4c   :  { %2365 = vmatmul.mubr.msk.f32.vlgmr.msra.gmra.mxu1 %vm164_vm1, %v238_v9  ;;  %2367 = vmatprep.subr.mxu0 %v2827_v2  ;;  %122 = vst.msk [vmem:[#allocation2 + $0x2] sm:$0x1] %vm113_vm0, %v121_v12  ;;  %v125_v13 = vld [vmem:[%s124_s2] sm:$0x1]  ;;  %s128_s6 = scalar_lea.vmem %s3378_s1, %s2946_s29 }
  0x4d   :  { %2378 = vmatprep.subr.mxu1 %v2827_v2  ;;  %2386 = vmatprep.mubr.msk.f32.mxu1 %vm2828_vm2, %v2827_v2  ;;  %126 = vst.msk [vmem:[#allocation2 + $0x3] sm:$0x1] %vm113_vm0, %v125_v13  ;;  %v129_v14 = vld [vmem:[%s128_s6] sm:$0x1]  ;;  %s132_s0 = scalar_lea.vmem %s3378_s1, %s2951_s30 }
  0x4e   :  { %2379 = vmatpush3.msra.mxu1 %v2924_v1  ;;  %130 = vst.msk [vmem:[#allocation2 + $0x4] sm:$0x1] %vm113_vm0, %v129_v14  ;;  %v133_v15 = vld [vmem:[%s132_s0] sm:$0x1]  ;;  %s136_s29 = scalar_lea.vmem %s3378_s1, %s2959_s15 }
  0x4f   :  { %2380 = vmatprep.subr.mxu1 %v2827_v2  ;;  %134 = vst.msk [vmem:[#allocation2 + $0x5] sm:$0x1] %vm113_vm0, %v133_v15  ;;  %v137_v16 = vld [vmem:[%s136_s29] sm:$0x1]  ;;  %s140_s18 = scalar_lea.vmem %s3378_s1, %s2970_s20 }
  0x50   :  { %2381 = vmatpush3.msra.mxu1 %v2928_v4  ;;  %138 = vst.msk [vmem:[#allocation2 + $0x6] sm:$0x1] %vm113_vm0, %v137_v16  ;;  %v141_v17 = vld [vmem:[%s140_s18] sm:$0x1] }
  0x51   :  { %2382 = vmatprep.subr.mxu1 %v2827_v2  ;;  %142 = vst.msk [vmem:[#allocation2 + $0x7] sm:$0x1] %vm113_vm0, %v141_v17 }
  0x52   :  { %2383 = vmatpush3.msra.mxu1 %v2937_v6 }
  0x53   :  { %2384 = vmatprep.subr.mxu1 %v2827_v2 }
  0x54   :  { %2385 = vmatpush3.msra.mxu1 %v2949_v8 }
  0x55   :  { %2400 = vmatprep.subr.mxu1 %v2827_v2 }
  0x58   :  { %v148_v18 = vld [vmem:[#allocation2] sm:$0xff] }
  0x59   :  { %2354 = vmatmul.mubr.msk.f32.vlgmr.msra.gmra.mxu0 %vm164_vm1, %v148_v18 }
  0x5a   :  { %2368 = vmatpush3.msra.mxu0 %v2924_v1  ;;  %2375 = vmatprep.mubr.msk.f32.mxu0 %vm2828_vm2, %v2827_v2 }
  0x5b   :  { %2369 = vmatprep.subr.mxu0 %v2827_v2 }
  0x5c   :  { %2370 = vmatpush3.msra.mxu0 %v2928_v4 }
  0x5d   :  { %2371 = vmatprep.subr.mxu0 %v2827_v2 }
  0x5e   :  { %2372 = vmatpush3.msra.mxu0 %v2937_v6 }
  0x5f   :  { %2373 = vmatprep.subr.mxu0 %v2827_v2 }
  0x60   :  { %2374 = vmatpush3.msra.mxu0 %v2949_v8 }
  0x61   :  { %2389 = vmatprep.subr.mxu0 %v2827_v2 }
 0x10c   :  { %v309_v19 = vpop.f32.mrf.mxu1 }
 0x10e   :  { %v2366_v20 = vpop.f32.mrf.mxu1 }
 0x119   :  { %v234_v22 = vpop.f32.mrf.mxu0 }
 0x11a   :  { %v3034_v23 = vadd.f32 %v2213_v21, %v234_v22 }
 0x11b   :  { %v2355_v24 = vpop.f32.mrf.mxu0 }
 0x11c   :  { %v313_v25 = vadd.f32 %v309_v19, %v3034_v23 }
 0x11e   :  { %v2216_v26 = vmul.f32 -1.442695, %v313_v25 }
 0x120   :  { %2566 = vpow2.f32 %v2216_v26 }
 0x121   :  { %2568 = vtanh.f32 %v313_v25 }
 0x12d   :  { %v2567_v27 = vpop.eup %2566 }
 0x12e   :  { %v317_v28 = vadd.f32 1.0, %v2567_v27  ;;  %v2569_v32 = vpop.eup %2568 }
 0x130   :  { %2570 = vrcp.f32 %v317_v28 }
 0x13d   :  { %v2571_v33 = vpop.eup %2570 }
 0x13e   :  { %v321_v34 = vsel %vm3037_vm5, %v2569_v32, %v2571_v33 }
 0x13f   :  { %328 = vrot.lane.b32.xlu0 %v321_v34, %s2829_s4 }
 0x143   :  { %323 = vrot.lane.b32.xlu0 %v239_v35, %s2830_s19 }
 0x1b1   :  { %v329_v36 = vpop.permute.xlu0 %328 }
 0x1b2   :  { %v331_v37 = vmul.f32 %v329_v36, %v321_v34 }
 0x1b4   :  { %333 = vrot.lane.b32.xlu1 %v331_v37, %s2830_s19 }
 0x1b5   :  { %v324_v38 = vpop.permute.xlu0 %323 }
 0x1b6   :  { %v326_v39 = vmul.f32 %v324_v38, %v321_v34 }
 0x226   :  { %v334_v40 = vpop.permute.xlu1 %333 }
 0x227   :  { %v336_v41 = vadd.f32 %v334_v40, %v326_v39 }
 0x229   :  { %2572 = vtanh.f32 %v336_v41  ;;  %v433_v58 = vrot.slane %v336_v41, 7 }
 0x236   :  { %v2573_v42 = vpop.eup %2572 }
 0x237   :  { %339 = vrot.lane.b32.xlu1 %v2573_v42, %s2829_s4 }
 0x2a9   :  { %v340_v43 = vpop.permute.xlu1 %339 }
 0x2aa   :  { %v342_v44 = vmul.f32 %v340_v43, %v321_v34 }
 0x2ac   :  { %344 = vrot.lane.b32.xlu0 %v342_v44, %s2830_s19 }
 0x31e   :  { %v345_v45 = vpop.permute.xlu0 %344 }
 0x31f   :  { %347 = vst.msk [vmem:[#allocation3] sm:$0x1] %vm113_vm0, %v345_v45  ;;  %2376 = vmatmul.mubr.msk.f32.vlgmr.msra.gmra.mxu0 %vm164_vm1, %v345_v45 }
 0x320   :  { %2390 = vmatpush3.msra.mxu0 %v2924_v1  ;;  %2397 = vmatprep.mubr.msk.f32.mxu0 %vm2828_vm2, %v2827_v2 }
 0x321   :  { %2391 = vmatprep.subr.mxu0 %v2827_v2 }
 0x322   :  { %2392 = vmatpush3.msra.mxu0 %v2928_v4 }
 0x323   :  { %2393 = vmatprep.subr.mxu0 %v2827_v2 }
 0x324   :  { %2394 = vmatpush3.msra.mxu0 %v2937_v6 }
 0x325   :  { %2395 = vmatprep.subr.mxu0 %v2827_v2 }
 0x326   :  { %2396 = vmatpush3.msra.mxu0 %v2949_v8 }
 0x327   :  { %2411 = vmatprep.subr.mxu0 %v2827_v2 }
 0x3df   :  { %v416_v46 = vpop.f32.mrf.mxu0 }
 0x3e0   :  { %v421_v47 = vrot.slane %v416_v46, 7 }
 0x3e1   :  { %v2377_v48 = vpop.f32.mrf.mxu0 }
 0x3e2   :  { %v423_v49 = vadd.f32 %v421_v47, %v3034_v23 }
 0x3e4   :  { %v2218_v50 = vmul.f32 -1.442695, %v423_v49 }
 0x3e6   :  { %2574 = vpow2.f32 %v2218_v50 }
 0x3e7   :  { %2576 = vtanh.f32 %v423_v49 }
 0x3f3   :  { %v2575_v51 = vpop.eup %2574 }
 0x3f4   :  { %v427_v52 = vadd.f32 1.0, %v2575_v51  ;;  %v2577_v53 = vpop.eup %2576 }
 0x3f6   :  { %2578 = vrcp.f32 %v427_v52 }
 0x403   :  { %v2579_v54 = vpop.eup %2578 }
 0x404   :  { %v431_v55 = vsel %vm3037_vm5, %v2577_v53, %v2579_v54 }
 0x405   :  { %437 = vrot.lane.b32.xlu1 %v431_v55, %s2829_s4  ;;  %v435_v59 = vmul.f32 %v433_v58, %v431_v55 }
 0x477   :  { %v438_v56 = vpop.permute.xlu1 %437 }
 0x478   :  { %v440_v57 = vmul.f32 %v438_v56, %v431_v55 }
 0x47a   :  { %442 = vrot.lane.b32.xlu0 %v440_v57, %s2830_s19 }
 0x4ec   :  { %v443_v60 = vpop.permute.xlu0 %442 }
 0x4ed   :  { %v445_v61 = vadd.f32 %v443_v60, %v435_v59 }
 0x4ef   :  { %2580 = vtanh.f32 %v445_v61  ;;  %v546_v20 = vrot.slane %v445_v61, 7 }
 0x4fc   :  { %v2581_v62 = vpop.eup %2580 }
 0x4fd   :  { %448 = vrot.lane.b32.xlu1 %v2581_v62, %s2829_s4 }
 0x56f   :  { %v449_v63 = vpop.permute.xlu1 %448 }
 0x570   :  { %v3069_v0 = vmul.f32 %v449_v63, %v431_v55 }
 0x572   :  { %v458_v3 = vrot.slane %v3069_v0, 1 }
 0x574   :  { %459 = vrot.lane.b32.xlu0 %v458_v3, %s2830_s19 }
 0x5e6   :  { %v460_v5 = vpop.permute.xlu0 %459 }
 0x5e7   :  { %2387 = vmatmul.mubr.msk.f32.vlgmr.msra.gmra.mxu1 %vm164_vm1, %v460_v5 }
 0x5e8   :  { %2401 = vmatpush3.msra.mxu1 %v2924_v1  ;;  %2408 = vmatprep.mubr.msk.f32.mxu1 %vm2828_vm2, %v2827_v2 }
 0x5e9   :  { %2402 = vmatprep.subr.mxu1 %v2827_v2 }
 0x5ea   :  { %2403 = vmatpush3.msra.mxu1 %v2928_v4 }
 0x5eb   :  { %2404 = vmatprep.subr.mxu1 %v2827_v2 }
 0x5ec   :  { %2405 = vmatpush3.msra.mxu1 %v2937_v6 }
 0x5ed   :  { %2406 = vmatprep.subr.mxu1 %v2827_v2 }
 0x5ee   :  { %2407 = vmatpush3.msra.mxu1 %v2949_v8 }
 0x5ef   :  { %2422 = vmatprep.subr.mxu1 %v2827_v2 }
 0x6a7   :  { %v529_v7 = vpop.f32.mrf.mxu1 }
 0x6a8   :  { %v534_v9 = vrot.slane %v529_v7, 6 }
 0x6a9   :  { %v2388_v10 = vpop.f32.mrf.mxu1 }
 0x6aa   :  { %v536_v11 = vadd.f32 %v534_v9, %v3034_v23 }
 0x6ac   :  { %v2220_v12 = vmul.f32 -1.442695, %v536_v11 }
 0x6ae   :  { %2582 = vpow2.f32 %v2220_v12 }
 0x6af   :  { %2584 = vtanh.f32 %v536_v11 }
 0x6bb   :  { %v2583_v13 = vpop.eup %2582 }
 0x6bc   :  { %v540_v14 = vadd.f32 1.0, %v2583_v13  ;;  %v2585_v15 = vpop.eup %2584 }
 0x6be   :  { %2586 = vrcp.f32 %v540_v14 }
 0x6cb   :  { %v2587_v16 = vpop.eup %2586 }
 0x6cc   :  { %v544_v17 = vsel %vm3037_vm5, %v2585_v15, %v2587_v16 }
 0x6cd   :  { %550 = vrot.lane.b32.xlu1 %v544_v17, %s2829_s4  ;;  %v548_v21 = vmul.f32 %v546_v20, %v544_v17 }
 0x73f   :  { %v551_v18 = vpop.permute.xlu1 %550 }
 0x740   :  { %v553_v19 = vmul.f32 %v551_v18, %v544_v17 }
 0x742   :  { %555 = vrot.lane.b32.xlu0 %v553_v19, %s2830_s19 }
 0x7b4   :  { %v556_v22 = vpop.permute.xlu0 %555 }
 0x7b5   :  { %v558_v24 = vadd.f32 %v556_v22, %v548_v21 }
 0x7b7   :  { %2588 = vtanh.f32 %v558_v24  ;;  %v659_v43 = vrot.slane %v558_v24, 7 }
 0x7c4   :  { %v2589_v25 = vpop.eup %2588 }
 0x7c5   :  { %561 = vrot.lane.b32.xlu1 %v2589_v25, %s2829_s4 }
 0x837   :  { %v562_v26 = vpop.permute.xlu1 %561 }
 0x838   :  { %v3090_v27 = vmul.f32 %v562_v26, %v544_v17 }
 0x83a   :  { %v571_v28 = vrot.slane %v3090_v27, 2 }
 0x83c   :  { %572 = vrot.lane.b32.xlu0 %v571_v28, %s2830_s19 }
 0x8ae   :  { %v573_v29 = vpop.permute.xlu0 %572 }
 0x8af   :  { %2398 = vmatmul.mubr.msk.f32.vlgmr.msra.gmra.mxu0 %vm164_vm1, %v573_v29 }
 0x8b0   :  { %2412 = vmatpush3.msra.mxu0 %v2924_v1  ;;  %2419 = vmatprep.mubr.msk.f32.mxu0 %vm2828_vm2, %v2827_v2 }
 0x8b1   :  { %2413 = vmatprep.subr.mxu0 %v2827_v2 }
 0x8b2   :  { %2414 = vmatpush3.msra.mxu0 %v2928_v4 }
 0x8b3   :  { %2415 = vmatprep.subr.mxu0 %v2827_v2 }
 0x8b4   :  { %2416 = vmatpush3.msra.mxu0 %v2937_v6 }
 0x8b5   :  { %2417 = vmatprep.subr.mxu0 %v2827_v2 }
 0x8b6   :  { %2418 = vmatpush3.msra.mxu0 %v2949_v8 }
 0x8b7   :  { %2433 = vmatprep.subr.mxu0 %v2827_v2 }
 0x96f   :  { %v642_v30 = vpop.f32.mrf.mxu0 }
 0x970   :  { %v647_v32 = vrot.slane %v642_v30, 5 }
 0x971   :  { %v2399_v33 = vpop.f32.mrf.mxu0 }
 0x972   :  { %v649_v34 = vadd.f32 %v647_v32, %v3034_v23 }
 0x974   :  { %v2222_v35 = vmul.f32 -1.442695, %v649_v34 }
 0x976   :  { %2590 = vpow2.f32 %v2222_v35 }
 0x977   :  { %2592 = vtanh.f32 %v649_v34 }
 0x983   :  { %v2591_v36 = vpop.eup %2590 }
 0x984   :  { %v653_v37 = vadd.f32 1.0, %v2591_v36  ;;  %v2593_v38 = vpop.eup %2592 }
 0x986   :  { %2594 = vrcp.f32 %v653_v37 }
 0x993   :  { %v2595_v39 = vpop.eup %2594 }
 0x994   :  { %v657_v40 = vsel %vm3037_vm5, %v2593_v38, %v2595_v39 }
 0x995   :  { %663 = vrot.lane.b32.xlu1 %v657_v40, %s2829_s4  ;;  %v661_v44 = vmul.f32 %v659_v43, %v657_v40 }
 0xa07   :  { %v664_v41 = vpop.permute.xlu1 %663 }
 0xa08   :  { %v666_v42 = vmul.f32 %v664_v41, %v657_v40 }
 0xa0a   :  { %668 = vrot.lane.b32.xlu0 %v666_v42, %s2830_s19 }
 0xa7c   :  { %v669_v45 = vpop.permute.xlu0 %668 }
 0xa7d   :  { %v671_v46 = vadd.f32 %v669_v45, %v661_v44 }
 0xa7f   :  { %2596 = vtanh.f32 %v671_v46  ;;  %v772_v3 = vrot.slane %v671_v46, 7 }
 0xa8c   :  { %v2597_v47 = vpop.eup %2596 }
 0xa8d   :  { %674 = vrot.lane.b32.xlu1 %v2597_v47, %s2829_s4 }
 0xaff   :  { %v675_v48 = vpop.permute.xlu1 %674 }
 0xb00   :  { %v3111_v49 = vmul.f32 %v675_v48, %v657_v40 }
 0xb02   :  { %v684_v50 = vrot.slane %v3111_v49, 3 }
 0xb04   :  { %685 = vrot.lane.b32.xlu0 %v684_v50, %s2830_s19 }
 0xb76   :  { %v686_v51 = vpop.permute.xlu0 %685 }
 0xb77   :  { %2409 = vmatmul.mubr.msk.f32.vlgmr.msra.gmra.mxu1 %vm164_vm1, %v686_v51 }
 0xb78   :  { %2423 = vmatpush3.msra.mxu1 %v2924_v1  ;;  %2430 = vmatprep.mubr.msk.f32.mxu1 %vm2828_vm2, %v2827_v2 }
 0xb79   :  { %2424 = vmatprep.subr.mxu1 %v2827_v2 }
 0xb7a   :  { %2425 = vmatpush3.msra.mxu1 %v2928_v4 }
 0xb7b   :  { %2426 = vmatprep.subr.mxu1 %v2827_v2 }
 0xb7c   :  { %2427 = vmatpush3.msra.mxu1 %v2937_v6 }
 0xb7d   :  { %2428 = vmatprep.subr.mxu1 %v2827_v2 }
 0xb7e   :  { %2429 = vmatpush3.msra.mxu1 %v2949_v8 }
 0xb7f   :  { %2444 = vmatprep.subr.mxu1 %v2827_v2 }
 0xc37   :  { %v755_v52 = vpop.f32.mrf.mxu1 }
 0xc38   :  { %v760_v53 = vrot.slane %v755_v52, 4 }
 0xc39   :  { %v2410_v54 = vpop.f32.mrf.mxu1 }
 0xc3a   :  { %v762_v55 = vadd.f32 %v760_v53, %v3034_v23 }
 0xc3c   :  { %v2224_v56 = vmul.f32 -1.442695, %v762_v55 }
 0xc3e   :  { %2598 = vpow2.f32 %v2224_v56 }
 0xc3f   :  { %2600 = vtanh.f32 %v762_v55 }
 0xc4b   :  { %v2599_v57 = vpop.eup %2598 }
 0xc4c   :  { %v766_v58 = vadd.f32 1.0, %v2599_v57  ;;  %v2601_v59 = vpop.eup %2600 }
 0xc4e   :  { %2602 = vrcp.f32 %v766_v58 }
 0xc5b   :  { %v2603_v60 = vpop.eup %2602 }
 0xc5c   :  { %v770_v61 = vsel %vm3037_vm5, %v2601_v59, %v2603_v60 }
 0xc5d   :  { %776 = vrot.lane.b32.xlu1 %v770_v61, %s2829_s4  ;;  %v774_v5 = vmul.f32 %v772_v3, %v770_v61 }
 0xccf   :  { %v777_v62 = vpop.permute.xlu1 %776 }
 0xcd0   :  { %v779_v63 = vmul.f32 %v777_v62, %v770_v61 }
 0xcd2   :  { %781 = vrot.lane.b32.xlu0 %v779_v63, %s2830_s19 }
 0xd44   :  { %v782_v7 = vpop.permute.xlu0 %781 }
 0xd45   :  { %v784_v9 = vadd.f32 %v782_v7, %v774_v5 }
 0xd47   :  { %2604 = vtanh.f32 %v784_v9  ;;  %v885_v24 = vrot.slane %v784_v9, 7 }
 0xd54   :  { %v2605_v10 = vpop.eup %2604 }
 0xd55   :  { %787 = vrot.lane.b32.xlu1 %v2605_v10, %s2829_s4 }
 0xdc7   :  { %v788_v11 = vpop.permute.xlu1 %787 }
 0xdc8   :  { %v3132_v12 = vmul.f32 %v788_v11, %v770_v61 }
 0xdca   :  { %v797_v13 = vrot.slane %v3132_v12, 4 }
 0xdcc   :  { %798 = vrot.lane.b32.xlu0 %v797_v13, %s2830_s19 }
 0xe3e   :  { %v799_v14 = vpop.permute.xlu0 %798 }
 0xe3f   :  { %2420 = vmatmul.mubr.msk.f32.vlgmr.msra.gmra.mxu0 %vm164_vm1, %v799_v14 }
 0xe40   :  { %2434 = vmatpush3.msra.mxu0 %v2924_v1  ;;  %2441 = vmatprep.mubr.msk.f32.mxu0 %vm2828_vm2, %v2827_v2 }
 0xe41   :  { %2435 = vmatprep.subr.mxu0 %v2827_v2 }
 0xe42   :  { %2436 = vmatpush3.msra.mxu0 %v2928_v4 }
 0xe43   :  { %2437 = vmatprep.subr.mxu0 %v2827_v2 }
 0xe44   :  { %2438 = vmatpush3.msra.mxu0 %v2937_v6 }
 0xe45   :  { %2439 = vmatprep.subr.mxu0 %v2827_v2 }
 0xe46   :  { %2440 = vmatpush3.msra.mxu0 %v2949_v8 }
 0xe47   :  { %2455 = vmatprep.subr.mxu0 %v2827_v2 }
 0xeff   :  { %v868_v15 = vpop.f32.mrf.mxu0 }
 0xf00   :  { %v873_v16 = vrot.slane %v868_v15, 3 }
 0xf01   :  { %v2421_v1 = vpop.f32.mrf.mxu0 }
 0xf02   :  { %v875_v17 = vadd.f32 %v873_v16, %v3034_v23 }
 0xf04   :  { %v2226_v18 = vmul.f32 -1.442695, %v875_v17 }
 0xf06   :  { %2606 = vpow2.f32 %v2226_v18  ;;  %v1143_v18 = vld [vmem:[#allocation11 + $0x10] sm:$0xff] }
 0xf07   :  { %2608 = vtanh.f32 %v875_v17  ;;  %v3183_v17 = vld [vmem:[#allocation12 + $0x18] sm:$0xff] }
 0xf13   :  { %v2607_v19 = vpop.eup %2606 }
 0xf14   :  { %v879_v20 = vadd.f32 1.0, %v2607_v19  ;;  %v2609_v4 = vpop.eup %2608  ;;  %v3186_v19 = vld [vmem:[#allocation12 + $0x10] sm:$0xff] }
 0xf16   :  { %2610 = vrcp.f32 %v879_v20  ;;  %v1142_v20 = vld [vmem:[#allocation11 + $0x8] sm:$0xff] }
 0xf23   :  { %v2611_v21 = vpop.eup %2610 }
 0xf24   :  { %v883_v6 = vsel %vm3037_vm5, %v2609_v4, %v2611_v21  ;;  %v3195_v4 = vld [vmem:[#allocation12] sm:$0xff]  ;;  %v1225_v21 = vld [vmem:[%s3385_s8 + $0x1] sm:$0x1] }
 0xf25   :  { %889 = vrot.lane.b32.xlu1 %v883_v6, %s2829_s4  ;;  %v887_v25 = vmul.f32 %v885_v24, %v883_v6  ;;  %v1226_v24 = vld [vmem:[%s3386_s9 + $0x1] sm:$0x1] }
 0xf97   :  { %v890_v8 = vpop.permute.xlu1 %889 }
 0xf98   :  { %v892_v22 = vmul.f32 %v890_v8, %v883_v6 }
 0xf9a   :  { %894 = vrot.lane.b32.xlu0 %v892_v22, %s2830_s19 }
0x100c   :  { %v895_v26 = vpop.permute.xlu0 %894 }
0x100d   :  { %v897_v28 = vadd.f32 %v895_v26, %v887_v25 }
0x100f   :  { %2612 = vtanh.f32 %v897_v28  ;;  %v998_v47 = vrot.slane %v897_v28, 7 }
0x101c   :  { %v2613_v29 = vpop.eup %2612 }
0x101d   :  { %900 = vrot.lane.b32.xlu1 %v2613_v29, %s2829_s4 }
0x108f   :  { %v901_v30 = vpop.permute.xlu1 %900 }
0x1090   :  { %v903_v32 = vmul.f32 %v901_v30, %v883_v6 }
0x1092   :  { %v910_v33 = vrot.slane %v903_v32, 5 }
0x1094   :  { %911 = vrot.lane.b32.xlu0 %v910_v33, %s2830_s19  ;;  %v2231_v33 = vld [vmem:[%s3384_s7] ss:$0 sm:$0xff] }
0x1106   :  { %v912_v34 = vpop.permute.xlu0 %911 }
0x1107   :  { %2431 = vmatmul.mubr.msk.f32.vlgmr.msra.gmra.mxu1 %vm164_vm1, %v912_v34 }
0x1108   :  { %2452 = vmatprep.mubr.msk.f32.mxu1 %vm2828_vm2, %v2827_v2 }
0x11c7   :  { %v981_v35 = vpop.f32.mrf.mxu1 }
0x11c8   :  { %v986_v36 = vrot.slane %v981_v35, 2 }
0x11c9   :  { %v2432_v37 = vpop.f32.mrf.mxu1 }
0x11ca   :  { %v988_v38 = vadd.f32 %v986_v36, %v3034_v23 }
0x11cc   :  { %v2228_v39 = vmul.f32 -1.442695, %v988_v38 }
0x11ce   :  { %2614 = vpow2.f32 %v2228_v39 }
0x11cf   :  { %2616 = vtanh.f32 %v988_v38 }
0x11db   :  { %v2615_v40 = vpop.eup %2614 }
0x11dc   :  { %v992_v41 = vadd.f32 1.0, %v2615_v40  ;;  %v2617_v42 = vpop.eup %2616 }
0x11de   :  { %2618 = vrcp.f32 %v992_v41 }
0x11eb   :  { %v2619_v43 = vpop.eup %2618 }
0x11ec   :  { %v996_v44 = vsel %vm3037_vm5, %v2617_v42, %v2619_v43 }
0x11ed   :  { %1002 = vrot.lane.b32.xlu1 %v996_v44, %s2829_s4  ;;  %v1000_v48 = vmul.f32 %v998_v47, %v996_v44 }
0x125f   :  { %v1003_v45 = vpop.permute.xlu1 %1002 }
0x1260   :  { %v1005_v46 = vmul.f32 %v1003_v45, %v996_v44 }
0x1262   :  { %1007 = vrot.lane.b32.xlu0 %v1005_v46, %s2830_s19 }
0x12d4   :  { %v1008_v50 = vpop.permute.xlu0 %1007 }
0x12d5   :  { %v1010_v51 = vadd.f32 %v1008_v50, %v1000_v48 }
0x12d7   :  { %2620 = vtanh.f32 %v1010_v51 }
0x12e4   :  { %v2621_v52 = vpop.eup %2620 }
0x12e5   :  { %1013 = vrot.lane.b32.xlu1 %v2621_v52, %s2829_s4 }
0x1357   :  { %v1014_v53 = vpop.permute.xlu1 %1013 }
0x1358   :  { %v1016_v54 = vmul.f32 %v1014_v53, %v996_v44 }
0x135a   :  { %v1023_v55 = vrot.slane %v1016_v54, 6 }
0x135c   :  { %1024 = vrot.lane.b32.xlu0 %v1023_v55, %s2830_s19 }
0x13ce   :  { %v1025_v56 = vpop.permute.xlu0 %1024 }
0x13cf   :  { %2442 = vmatmul.mubr.msk.f32.vlgmr.msra.gmra.mxu0 %vm164_vm1, %v1025_v56 }
0x13d0   :  { %2463 = vmatprep.mubr.msk.f32.mxu0 %vm2828_vm2, %v2827_v2  ;;  %2456 = vmatpush3.msra.mxu0 %v3183_v17 }
0x13d1   :  { %2457 = vmatprep.subr.mxu0 %v2827_v2 }
0x13d2   :  { %2458 = vmatpush3.msra.mxu0 %v3186_v19 }
0x13d3   :  { %2459 = vmatprep.subr.mxu0 %v2827_v2 }
0x148f   :  { %v1094_v57 = vpop.f32.mrf.mxu0 }
0x1490   :  { %v1099_v58 = vrot.slane %v1094_v57, 1 }
0x1491   :  { %v2443_v59 = vpop.f32.mrf.mxu0 }
0x1492   :  { %v1101_v60 = vadd.f32 %v1099_v58, %v3034_v23  ;;  %v1111_v23 = vrot.slane %v1010_v51, 7 }
0x1494   :  { %v2230_v61 = vmul.f32 -1.442695, %v1101_v60 }
0x1496   :  { %2622 = vpow2.f32 %v2230_v61 }
0x1497   :  { %2624 = vtanh.f32 %v1101_v60 }
0x14a3   :  { %v2623_v62 = vpop.eup %2622 }
0x14a4   :  { %v1105_v63 = vadd.f32 1.0, %v2623_v62  ;;  %v2625_v3 = vpop.eup %2624 }
0x14a6   :  { %2626 = vrcp.f32 %v1105_v63 }
0x14b3   :  { %v2627_v5 = vpop.eup %2626 }
0x14b4   :  { %v1109_v7 = vsel %vm3037_vm5, %v2625_v3, %v2627_v5 }
0x14b5   :  { %1115 = vrot.lane.b32.xlu1 %v1109_v7, %s2829_s4  ;;  %v1113_v11 = vmul.f32 %v1111_v23, %v1109_v7 }
0x1527   :  { %v1116_v9 = vpop.permute.xlu1 %1115 }
0x1528   :  { %v1118_v10 = vmul.f32 %v1116_v9, %v1109_v7 }
0x152a   :  { %1120 = vrot.lane.b32.xlu0 %v1118_v10, %s2830_s19 }
0x152e   :  { %453 = vrot.lane.b32.xlu0 %v3069_v0, %s2830_s19 }
0x1532   :  { %679 = vrot.lane.b32.xlu0 %v3111_v49, %s2830_s19  ;;  %v1144_v49 = vld [vmem:[#allocation11 + $0x18] sm:$0xff] }
0x1533   :  { %2445 = vmatpush3.msra.mxu1 %v1144_v49 }
0x1534   :  { %2446 = vmatprep.subr.mxu1 %v2827_v2 }
0x1535   :  { %2447 = vmatpush3.msra.mxu1 %v1143_v18 }
0x1536   :  { %905 = vrot.lane.b32.xlu0 %v903_v32, %s2830_s19  ;;  %2448 = vmatprep.subr.mxu1 %v2827_v2 }
0x1537   :  { %2449 = vmatpush3.msra.mxu1 %v1142_v20 }
0x1538   :  { %2450 = vmatprep.subr.mxu1 %v2827_v2 }
0x159c   :  { %v1121_v13 = vpop.permute.xlu0 %1120 }
0x159d   :  { %v1123_v14 = vadd.f32 %v1121_v13, %v1113_v11 }
0x159f   :  { %2628 = vtanh.f32 %v1123_v14 }
0x15a0   :  { %v454_v15 = vpop.permute.xlu0 %453 }
0x15a1   :  { %457 = vst.msk [vmem:[#allocation3] sm:$0x2] %vm456_vm6, %v454_v15 }
0x15a4   :  { %v680_v16 = vpop.permute.xlu0 %679 }
0x15a5   :  { %683 = vst.msk [vmem:[#allocation3] sm:$0x8] %vm682_vm7, %v680_v16 }
0x15a8   :  { %v906_v1 = vpop.permute.xlu0 %905 }
0x15a9   :  { %909 = vst.msk [vmem:[#allocation3] sm:$0x20] %vm908_vm8, %v906_v1 }
0x15ac   :  { %v2629_v0 = vpop.eup %2628 }
0x15ad   :  { %1126 = vrot.lane.b32.xlu1 %v2629_v0, %s2829_s4 }
0x15b1   :  { %566 = vrot.lane.b32.xlu1 %v3090_v27, %s2830_s19  ;;  %v3190_v27 = vld [vmem:[#allocation12 + $0x8] sm:$0xff] }
0x15b2   :  { %2460 = vmatpush3.msra.mxu0 %v3190_v27 }
0x15b3   :  { %2461 = vmatprep.subr.mxu0 %v2827_v2 }
0x15b4   :  { %2462 = vmatpush3.msra.mxu0 %v3195_v4 }
0x15b5   :  { %792 = vrot.lane.b32.xlu1 %v3132_v12, %s2830_s19  ;;  %v1141_v12 = vld [vmem:[#allocation11] sm:$0xff]  ;;  %2464 = vmatmul.mubr.msk.f32.vlgmr.msra.gmra.mxu0 %vm164_vm1, %v1225_v21 }
0x15b6   :  { %2451 = vmatpush3.msra.mxu1 %v1141_v12  ;;  %2477 = vmatprep.subr.mxu0 %v2827_v2 }
0x15b7   :  { %2466 = vmatprep.subr.mxu1 %v2827_v2  ;;  %2485 = vmatprep.mubr.msk.f32.mxu0 %vm2828_vm2, %v2827_v2 }
0x15b8   :  { %2478 = vmatpush3.msra.mxu0 %v3183_v17 }
0x15b9   :  { %1018 = vrot.lane.b32.xlu1 %v1016_v54, %s2830_s19  ;;  %2479 = vmatprep.subr.mxu0 %v2827_v2 }
0x15ba   :  { %2480 = vmatpush3.msra.mxu0 %v3186_v19 }
0x15bb   :  { %2481 = vmatprep.subr.mxu0 %v2827_v2 }
0x15bc   :  { %2482 = vmatpush3.msra.mxu0 %v3190_v27 }
0x15bd   :  { %2483 = vmatprep.subr.mxu0 %v2827_v2 }
0x15be   :  { %2484 = vmatpush3.msra.mxu0 %v3195_v4 }
0x15bf   :  { %2499 = vmatprep.subr.mxu0 %v2827_v2 }
0x161f   :  { %v1127_v6 = vpop.permute.xlu1 %1126 }
0x1620   :  { %v1129_v8 = vmul.f32 %v1127_v6, %v1109_v7 }
0x1622   :  { %1131 = vrot.lane.b32.xlu0 %v1129_v8, %s2830_s19 }
0x1623   :  { %v567_v22 = vpop.permute.xlu1 %566 }
0x1624   :  { %570 = vst.msk [vmem:[#allocation3] sm:$0x4] %vm569_vm9, %v567_v22 }
0x1626   :  { %1310 = vrot.lane.b32.xlu0 %v1226_v24, %s2830_s19 }
0x1627   :  { %v793_v25 = vpop.permute.xlu1 %792 }
0x1628   :  { %796 = vst.msk [vmem:[#allocation3] sm:$0x10] %vm795_vm10, %v793_v25 }
0x162b   :  { %v1019_v26 = vpop.permute.xlu1 %1018 }
0x162c   :  { %1022 = vst.msk [vmem:[#allocation3] sm:$0x40] %vm1021_vm11, %v1019_v26 }
0x1675   :  { %v1296_v30 = vpop.f32.mrf.mxu0 }
0x1677   :  { %v2465_v32 = vpop.f32.mrf.mxu0 }
0x1694   :  { %v1132_v28 = vpop.permute.xlu0 %1131 }
0x1695   :  { %1135 = vst.msk [vmem:[#allocation3] sm:$0x80] %vm1134_vm12, %v1132_v28 }
0x1698   :  { %v1311_v46 = vpop.permute.xlu0 %1310 }
0x169c   :  { %v1136_v29 = vld [vmem:[#allocation3] sm:$0xff] }
0x169d   :  { %2453 = vmatmul.mubr.msk.f32.vlgmr.msra.gmra.mxu1 %vm164_vm1, %v1136_v29 }
0x169e   :  { %2467 = vmatpush3.msra.mxu1 %v3183_v17  ;;  %2474 = vmatprep.mubr.msk.f32.mxu1 %vm2828_vm2, %v2827_v2 }
0x169f   :  { %2468 = vmatprep.subr.mxu1 %v2827_v2 }
0x16a0   :  { %2469 = vmatpush3.msra.mxu1 %v3186_v19 }
0x16a1   :  { %2470 = vmatprep.subr.mxu1 %v2827_v2 }
0x16a2   :  { %2471 = vmatpush3.msra.mxu1 %v3190_v27 }
0x16a3   :  { %2472 = vmatprep.subr.mxu1 %v2827_v2 }
0x16a4   :  { %2473 = vmatpush3.msra.mxu1 %v3195_v4 }
0x16a5   :  { %2488 = vmatprep.subr.mxu1 %v2827_v2 }
0x175d   :  { %v1221_v34 = vpop.f32.mrf.mxu1 }
0x175e   :  { %v3236_v35 = vadd.f32 %v2231_v33, %v1221_v34 }
0x175f   :  { %v2454_v36 = vpop.f32.mrf.mxu1 }
0x1760   :  { %v1300_v37 = vadd.f32 %v1296_v30, %v3236_v35 }
0x1762   :  { %v2234_v38 = vmul.f32 -1.442695, %v1300_v37 }
0x1764   :  { %2630 = vpow2.f32 %v2234_v38 }
0x1765   :  { %2632 = vtanh.f32 %v1300_v37 }
0x1771   :  { %v2631_v39 = vpop.eup %2630 }
0x1772   :  { %v1304_v40 = vadd.f32 1.0, %v2631_v39  ;;  %v2633_v41 = vpop.eup %2632 }
0x1774   :  { %2634 = vrcp.f32 %v1304_v40 }
0x1781   :  { %v2635_v42 = vpop.eup %2634 }
0x1782   :  { %v1308_v43 = vsel %vm3037_vm5, %v2633_v41, %v2635_v42 }
0x1783   :  { %1315 = vrot.lane.b32.xlu1 %v1308_v43, %s2829_s4  ;;  %v1313_v47 = vmul.f32 %v1311_v46, %v1308_v43 }
0x17f5   :  { %v1316_v44 = vpop.permute.xlu1 %1315 }
0x17f6   :  { %v1318_v45 = vmul.f32 %v1316_v44, %v1308_v43 }
0x17f8   :  { %1320 = vrot.lane.b32.xlu1 %v1318_v45, %s2830_s19 }
0x186a   :  { %v1321_v48 = vpop.permute.xlu1 %1320 }
0x186b   :  { %v1323_v50 = vadd.f32 %v1321_v48, %v1313_v47 }
0x186d   :  { %2636 = vtanh.f32 %v1323_v50  ;;  %v1418_v9 = vrot.slane %v1323_v50, 7 }
0x187a   :  { %v2637_v51 = vpop.eup %2636 }
0x187b   :  { %1326 = vrot.lane.b32.xlu0 %v2637_v51, %s2829_s4 }
0x18ed   :  { %v1327_v52 = vpop.permute.xlu0 %1326 }
0x18ee   :  { %v1329_v53 = vmul.f32 %v1327_v52, %v1308_v43 }
0x18f0   :  { %1331 = vrot.lane.b32.xlu1 %v1329_v53, %s2830_s19 }
0x1962   :  { %v1332_v54 = vpop.permute.xlu1 %1331 }
0x1963   :  { %2475 = vmatmul.mubr.msk.f32.vlgmr.msra.gmra.mxu1 %vm164_vm1, %v1332_v54 }
0x1964   :  { %2489 = vmatpush3.msra.mxu1 %v3183_v17  ;;  %2496 = vmatprep.mubr.msk.f32.mxu1 %vm2828_vm2, %v2827_v2 }
0x1965   :  { %2490 = vmatprep.subr.mxu1 %v2827_v2 }
0x1966   :  { %2491 = vmatpush3.msra.mxu1 %v3186_v19 }
0x1967   :  { %2492 = vmatprep.subr.mxu1 %v2827_v2 }
0x1968   :  { %2493 = vmatpush3.msra.mxu1 %v3190_v27 }
0x1969   :  { %2494 = vmatprep.subr.mxu1 %v2827_v2 }
0x196a   :  { %2495 = vmatpush3.msra.mxu1 %v3195_v4 }
0x196b   :  { %2510 = vmatprep.subr.mxu1 %v2827_v2 }
0x1a23   :  { %v1401_v55 = vpop.f32.mrf.mxu1 }
0x1a24   :  { %v1406_v56 = vrot.slane %v1401_v55, 7 }
0x1a25   :  { %v2476_v57 = vpop.f32.mrf.mxu1 }
0x1a26   :  { %v1408_v58 = vadd.f32 %v1406_v56, %v3236_v35 }
0x1a28   :  { %v2236_v59 = vmul.f32 -1.442695, %v1408_v58 }
0x1a2a   :  { %2638 = vpow2.f32 %v2236_v59 }
0x1a2b   :  { %2640 = vtanh.f32 %v1408_v58 }
0x1a37   :  { %v2639_v60 = vpop.eup %2638 }
0x1a38   :  { %v1412_v61 = vadd.f32 1.0, %v2639_v60  ;;  %v2641_v62 = vpop.eup %2640 }
0x1a3a   :  { %2642 = vrcp.f32 %v1412_v61 }
0x1a47   :  { %v2643_v63 = vpop.eup %2642 }
0x1a48   :  { %v1416_v3 = vsel %vm3037_vm5, %v2641_v62, %v2643_v63 }
0x1a49   :  { %1422 = vrot.lane.b32.xlu0 %v1416_v3, %s2829_s4  ;;  %v1420_v10 = vmul.f32 %v1418_v9, %v1416_v3 }
0x1abb   :  { %v1423_v5 = vpop.permute.xlu0 %1422 }
0x1abc   :  { %v1425_v7 = vmul.f32 %v1423_v5, %v1416_v3 }
0x1abe   :  { %1427 = vrot.lane.b32.xlu1 %v1425_v7, %s2830_s19 }
0x1b30   :  { %v1428_v23 = vpop.permute.xlu1 %1427 }
0x1b31   :  { %v1430_v11 = vadd.f32 %v1428_v23, %v1420_v10 }
0x1b33   :  { %2644 = vtanh.f32 %v1430_v11  ;;  %v1526_v28 = vrot.slane %v1430_v11, 7 }
0x1b40   :  { %v2645_v13 = vpop.eup %2644 }
0x1b41   :  { %1433 = vrot.lane.b32.xlu0 %v2645_v13, %s2829_s4 }
0x1bb3   :  { %v1434_v14 = vpop.permute.xlu0 %1433 }
0x1bb4   :  { %v1436_v15 = vmul.f32 %v1434_v14, %v1416_v3 }
0x1bb6   :  { %v1438_v16 = vrot.slane %v1436_v15, 1 }
0x1bb8   :  { %1439 = vrot.lane.b32.xlu1 %v1438_v16, %s2830_s19 }
0x1c2a   :  { %v1440_v1 = vpop.permute.xlu1 %1439 }
0x1c2b   :  { %2486 = vmatmul.mubr.msk.f32.vlgmr.msra.gmra.mxu0 %vm164_vm1, %v1440_v1 }
0x1c2c   :  { %2500 = vmatpush3.msra.mxu0 %v3183_v17  ;;  %2507 = vmatprep.mubr.msk.f32.mxu0 %vm2828_vm2, %v2827_v2 }
0x1c2d   :  { %2501 = vmatprep.subr.mxu0 %v2827_v2 }
0x1c2e   :  { %2502 = vmatpush3.msra.mxu0 %v3186_v19 }
0x1c2f   :  { %2503 = vmatprep.subr.mxu0 %v2827_v2 }
0x1c30   :  { %2504 = vmatpush3.msra.mxu0 %v3190_v27 }
0x1c31   :  { %2505 = vmatprep.subr.mxu0 %v2827_v2 }
0x1c32   :  { %2506 = vmatpush3.msra.mxu0 %v3195_v4 }
0x1c33   :  { %2521 = vmatprep.subr.mxu0 %v2827_v2 }
0x1ceb   :  { %v1509_v0 = vpop.f32.mrf.mxu0 }
0x1cec   :  { %v1514_v49 = vrot.slane %v1509_v0, 6 }
0x1ced   :  { %v2487_v18 = vpop.f32.mrf.mxu0 }
0x1cee   :  { %v1516_v20 = vadd.f32 %v1514_v49, %v3236_v35 }
0x1cf0   :  { %v2238_v12 = vmul.f32 -1.442695, %v1516_v20 }
0x1cf2   :  { %2646 = vpow2.f32 %v2238_v12 }
0x1cf3   :  { %2648 = vtanh.f32 %v1516_v20 }
0x1cff   :  { %v2647_v21 = vpop.eup %2646 }
0x1d00   :  { %v1520_v6 = vadd.f32 1.0, %v2647_v21  ;;  %v2649_v8 = vpop.eup %2648 }
0x1d02   :  { %2650 = vrcp.f32 %v1520_v6 }
0x1d0f   :  { %v2651_v22 = vpop.eup %2650 }
0x1d10   :  { %v1524_v24 = vsel %vm3037_vm5, %v2649_v8, %v2651_v22 }
0x1d11   :  { %1530 = vrot.lane.b32.xlu0 %v1524_v24, %s2829_s4  ;;  %v1528_v29 = vmul.f32 %v1526_v28, %v1524_v24 }
0x1d83   :  { %v1531_v25 = vpop.permute.xlu0 %1530 }
0x1d84   :  { %v1533_v26 = vmul.f32 %v1531_v25, %v1524_v24 }
0x1d86   :  { %1535 = vrot.lane.b32.xlu1 %v1533_v26, %s2830_s19 }
0x1df8   :  { %v1536_v30 = vpop.permute.xlu1 %1535 }
0x1df9   :  { %v1538_v32 = vadd.f32 %v1536_v30, %v1528_v29 }
0x1dfb   :  { %2652 = vtanh.f32 %v1538_v32  ;;  %v1634_v52 = vrot.slane %v1538_v32, 7 }
0x1e08   :  { %v2653_v33 = vpop.eup %2652 }
0x1e09   :  { %1541 = vrot.lane.b32.xlu0 %v2653_v33, %s2829_s4 }
0x1e7b   :  { %v1542_v34 = vpop.permute.xlu0 %1541 }
0x1e7c   :  { %v1544_v36 = vmul.f32 %v1542_v34, %v1524_v24 }
0x1e7e   :  { %v1546_v37 = vrot.slane %v1544_v36, 2 }
0x1e80   :  { %1547 = vrot.lane.b32.xlu1 %v1546_v37, %s2830_s19 }
0x1ef2   :  { %v1548_v38 = vpop.permute.xlu1 %1547 }
0x1ef3   :  { %2497 = vmatmul.mubr.msk.f32.vlgmr.msra.gmra.mxu1 %vm164_vm1, %v1548_v38 }
0x1ef4   :  { %2511 = vmatpush3.msra.mxu1 %v3183_v17  ;;  %2518 = vmatprep.mubr.msk.f32.mxu1 %vm2828_vm2, %v2827_v2 }
0x1ef5   :  { %2512 = vmatprep.subr.mxu1 %v2827_v2 }
0x1ef6   :  { %2513 = vmatpush3.msra.mxu1 %v3186_v19 }
0x1ef7   :  { %2514 = vmatprep.subr.mxu1 %v2827_v2 }
0x1ef8   :  { %2515 = vmatpush3.msra.mxu1 %v3190_v27 }
0x1ef9   :  { %2516 = vmatprep.subr.mxu1 %v2827_v2 }
0x1efa   :  { %2517 = vmatpush3.msra.mxu1 %v3195_v4 }
0x1efb   :  { %2532 = vmatprep.subr.mxu1 %v2827_v2 }
0x1fb3   :  { %v1617_v39 = vpop.f32.mrf.mxu1 }
0x1fb4   :  { %v1622_v40 = vrot.slane %v1617_v39, 5 }
0x1fb5   :  { %v2498_v41 = vpop.f32.mrf.mxu1 }
0x1fb6   :  { %v1624_v42 = vadd.f32 %v1622_v40, %v3236_v35 }
0x1fb8   :  { %v2240_v43 = vmul.f32 -1.442695, %v1624_v42 }
0x1fba   :  { %2654 = vpow2.f32 %v2240_v43 }
0x1fbb   :  { %2656 = vtanh.f32 %v1624_v42 }
0x1fc7   :  { %v2655_v44 = vpop.eup %2654 }
0x1fc8   :  { %v1628_v45 = vadd.f32 1.0, %v2655_v44  ;;  %v2657_v46 = vpop.eup %2656 }
0x1fca   :  { %2658 = vrcp.f32 %v1628_v45 }
0x1fd7   :  { %v2659_v47 = vpop.eup %2658 }
0x1fd8   :  { %v1632_v48 = vsel %vm3037_vm5, %v2657_v46, %v2659_v47 }
0x1fd9   :  { %1638 = vrot.lane.b32.xlu0 %v1632_v48, %s2829_s4  ;;  %v1636_v53 = vmul.f32 %v1634_v52, %v1632_v48 }
0x204b   :  { %v1639_v50 = vpop.permute.xlu0 %1638 }
0x204c   :  { %v1641_v51 = vmul.f32 %v1639_v50, %v1632_v48 }
0x204e   :  { %1643 = vrot.lane.b32.xlu1 %v1641_v51, %s2830_s19 }
0x20c0   :  { %v1644_v54 = vpop.permute.xlu1 %1643 }
0x20c1   :  { %v1646_v55 = vadd.f32 %v1644_v54, %v1636_v53 }
0x20c3   :  { %2660 = vtanh.f32 %v1646_v55  ;;  %v1742_v15 = vrot.slane %v1646_v55, 7 }
0x20d0   :  { %v2661_v56 = vpop.eup %2660 }
0x20d1   :  { %1649 = vrot.lane.b32.xlu0 %v2661_v56, %s2829_s4 }
0x2143   :  { %v1650_v57 = vpop.permute.xlu0 %1649 }
0x2144   :  { %v1652_v58 = vmul.f32 %v1650_v57, %v1632_v48 }
0x2146   :  { %v1654_v59 = vrot.slane %v1652_v58, 3 }
0x2148   :  { %1655 = vrot.lane.b32.xlu1 %v1654_v59, %s2830_s19 }
0x21ba   :  { %v1656_v60 = vpop.permute.xlu1 %1655 }
0x21bb   :  { %2508 = vmatmul.mubr.msk.f32.vlgmr.msra.gmra.mxu0 %vm164_vm1, %v1656_v60 }
0x21bc   :  { %2522 = vmatpush3.msra.mxu0 %v3183_v17  ;;  %2529 = vmatprep.mubr.msk.f32.mxu0 %vm2828_vm2, %v2827_v2 }
0x21bd   :  { %2523 = vmatprep.subr.mxu0 %v2827_v2 }
0x21be   :  { %2524 = vmatpush3.msra.mxu0 %v3186_v19 }
0x21bf   :  { %2525 = vmatprep.subr.mxu0 %v2827_v2 }
0x21c0   :  { %2526 = vmatpush3.msra.mxu0 %v3190_v27 }
0x21c1   :  { %2527 = vmatprep.subr.mxu0 %v2827_v2 }
0x21c2   :  { %2528 = vmatpush3.msra.mxu0 %v3195_v4 }
0x21c3   :  { %2543 = vmatprep.subr.mxu0 %v2827_v2 }
0x227b   :  { %v1725_v61 = vpop.f32.mrf.mxu0 }
0x227c   :  { %v1730_v62 = vrot.slane %v1725_v61, 4 }
0x227d   :  { %v2509_v63 = vpop.f32.mrf.mxu0 }
0x227e   :  { %v1732_v3 = vadd.f32 %v1730_v62, %v3236_v35 }
0x2280   :  { %v2242_v5 = vmul.f32 -1.442695, %v1732_v3 }
0x2282   :  { %2662 = vpow2.f32 %v2242_v5 }
0x2283   :  { %2664 = vtanh.f32 %v1732_v3 }
0x228f   :  { %v2663_v7 = vpop.eup %2662 }
0x2290   :  { %v1736_v9 = vadd.f32 1.0, %v2663_v7  ;;  %v2665_v10 = vpop.eup %2664 }
0x2292   :  { %2666 = vrcp.f32 %v1736_v9 }
0x229f   :  { %v2667_v23 = vpop.eup %2666 }
0x22a0   :  { %v1740_v11 = vsel %vm3037_vm5, %v2665_v10, %v2667_v23 }
0x22a1   :  { %1746 = vrot.lane.b32.xlu0 %v1740_v11, %s2829_s4  ;;  %v1744_v16 = vmul.f32 %v1742_v15, %v1740_v11 }
0x2313   :  { %v1747_v13 = vpop.permute.xlu0 %1746 }
0x2314   :  { %v1749_v14 = vmul.f32 %v1747_v13, %v1740_v11 }
0x2316   :  { %1751 = vrot.lane.b32.xlu1 %v1749_v14, %s2830_s19 }
0x2388   :  { %v1752_v1 = vpop.permute.xlu1 %1751 }
0x2389   :  { %v1754_v0 = vadd.f32 %v1752_v1, %v1744_v16 }
0x238b   :  { %2668 = vtanh.f32 %v1754_v0  ;;  %v1850_v30 = vrot.slane %v1754_v0, 7 }
0x2398   :  { %v2669_v49 = vpop.eup %2668 }
0x2399   :  { %1757 = vrot.lane.b32.xlu0 %v2669_v49, %s2829_s4 }
0x240b   :  { %v1758_v18 = vpop.permute.xlu0 %1757 }
0x240c   :  { %v1760_v20 = vmul.f32 %v1758_v18, %v1740_v11  ;;  %v2088_v18 = vld [vmem:[%s3387_s10 + $0x18] sm:$0xff] }
0x240e   :  { %v1762_v12 = vrot.slane %v1760_v20, 4  ;;  %v2086_v20 = vld [vmem:[%s3387_s10 + $0x8] sm:$0xff] }
0x2410   :  { %1763 = vrot.lane.b32.xlu1 %v1762_v12, %s2830_s19  ;;  %v2085_v12 = vld [vmem:[%s3387_s10] sm:$0xff]  ;;  %s2831_s10 = smov [#allocation14]  }
0x2482   :  { %v1764_v21 = vpop.permute.xlu1 %1763 }
0x2483   :  { %2519 = vmatmul.mubr.msk.f32.vlgmr.msra.gmra.mxu1 %vm164_vm1, %v1764_v21 }
0x2484   :  { %2533 = vmatpush3.msra.mxu1 %v3183_v17  ;;  %2540 = vmatprep.mubr.msk.f32.mxu1 %vm2828_vm2, %v2827_v2 }
0x2485   :  { %2534 = vmatprep.subr.mxu1 %v2827_v2 }
0x2486   :  { %2535 = vmatpush3.msra.mxu1 %v3186_v19 }
0x2487   :  { %2536 = vmatprep.subr.mxu1 %v2827_v2 }
0x2488   :  { %2537 = vmatpush3.msra.mxu1 %v3190_v27 }
0x2489   :  { %2538 = vmatprep.subr.mxu1 %v2827_v2 }
0x248a   :  { %2539 = vmatpush3.msra.mxu1 %v3195_v4 }
0x2543   :  { %v1833_v6 = vpop.f32.mrf.mxu1 }
0x2544   :  { %v1838_v8 = vrot.slane %v1833_v6, 3 }
0x2545   :  { %v2520_v22 = vpop.f32.mrf.mxu1 }
0x2546   :  { %v1840_v17 = vadd.f32 %v1838_v8, %v3236_v35 }
0x2548   :  { %v2244_v24 = vmul.f32 -1.442695, %v1840_v17 }
0x254a   :  { %2670 = vpow2.f32 %v2244_v24  ;;  %v2089_v24 = vld [vmem:[%s3388_s11] sm:$0x1]  ;;  %s2186_s11 = sshll.u32 %s2831_s10, 4  ;;  %s2187_s11 = int_to_ptr.vmem [resolvable:$true] %s2186_s11 }
0x254b   :  { %2672 = vtanh.f32 %v1840_v17  ;;  %s2790_s13 = scalar_lea.vmem %s2187_s11, 16  ;;  %s2794_s14 = scalar_lea.vmem %s2187_s11, 32 }
0x254c   :  { %p2791_p11 = scmp.ne.s32.totalorder %s2187_s11, %s2790_s13  ;;  %p2795_p12 = scmp.lt.s32.totalorder %s2187_s11, %s2187_s11 }
0x254d   :  { %p2796_p13 = scmp.lt.s32.totalorder %s2794_s14, %s2790_s13 }
0x254f   :  { %p2797_p0 = por %p2796_p13, %p2795_p12 }
0x2551   :  { %p2798_p1 = pnand %p2797_p0, %p2791_p11 }
0x2557   :  { %v2671_v25 = vpop.eup %2670 }
0x2558   :  { %v1844_v26 = vadd.f32 1.0, %v2671_v25  ;;  %v2673_v19 = vpop.eup %2672 }
0x255a   :  { %2674 = vrcp.f32 %v1844_v26 }
0x2567   :  { %v2675_v28 = vpop.eup %2674 }
0x2568   :  { %v1848_v27 = vsel %vm3037_vm5, %v2673_v19, %v2675_v28 }
0x2569   :  { %1854 = vrot.lane.b32.xlu0 %v1848_v27, %s2829_s4  ;;  %v1852_v32 = vmul.f32 %v1850_v30, %v1848_v27 }
0x25db   :  { %v1855_v29 = vpop.permute.xlu0 %1854 }
0x25dc   :  { %v1857_v4 = vmul.f32 %v1855_v29, %v1848_v27 }
0x25de   :  { %1859 = vrot.lane.b32.xlu1 %v1857_v4, %s2830_s19 }
0x2650   :  { %v1860_v33 = vpop.permute.xlu1 %1859 }
0x2651   :  { %v1862_v34 = vadd.f32 %v1860_v33, %v1852_v32 }
0x2653   :  { %2676 = vtanh.f32 %v1862_v34  ;;  %v1958_v54 = vrot.slane %v1862_v34, 7 }
0x2660   :  { %v2677_v36 = vpop.eup %2676 }
0x2661   :  { %1865 = vrot.lane.b32.xlu0 %v2677_v36, %s2829_s4 }
0x26d3   :  { %v1866_v37 = vpop.permute.xlu0 %1865 }
0x26d4   :  { %v1868_v38 = vmul.f32 %v1866_v37, %v1848_v27 }
0x26d6   :  { %v1870_v39 = vrot.slane %v1868_v38, 5 }
0x26d8   :  { %1871 = vrot.lane.b32.xlu1 %v1870_v39, %s2830_s19 }
0x274a   :  { %v1872_v40 = vpop.permute.xlu1 %1871 }
0x274b   :  { %2530 = vmatmul.mubr.msk.f32.vlgmr.msra.gmra.mxu0 %vm164_vm1, %v1872_v40 }
0x274c   :  { %2551 = vmatprep.mubr.msk.f32.mxu0 %vm2828_vm2, %v2827_v2  ;;  %2544 = vmatpush3.msra.mxu0 %v2088_v18 }
0x274d   :  { %2545 = vmatprep.subr.mxu0 %v2827_v2 }
0x274e   :  { %2546 = vmatpush3.msra.mxu0 %v2087_v31 }
0x274f   :  { %2547 = vmatprep.subr.mxu0 %v2827_v2 }
0x2750   :  { %2548 = vmatpush3.msra.mxu0 %v2086_v20 }
0x2751   :  { %2549 = vmatprep.subr.mxu0 %v2827_v2 }
0x2752   :  { %2550 = vmatpush3.msra.mxu0 %v2085_v12 }
0x280b   :  { %v1941_v41 = vpop.f32.mrf.mxu0 }
0x280c   :  { %v1946_v42 = vrot.slane %v1941_v41, 2 }
0x280d   :  { %v2531_v43 = vpop.f32.mrf.mxu0 }
0x280e   :  { %v1948_v44 = vadd.f32 %v1946_v42, %v3236_v35 }
0x2810   :  { %v2246_v45 = vmul.f32 -1.442695, %v1948_v44 }
0x2812   :  { %2678 = vpow2.f32 %v2246_v45 }
0x2813   :  { %2680 = vtanh.f32 %v1948_v44 }
0x281f   :  { %v2679_v46 = vpop.eup %2678 }
0x2820   :  { %v1952_v47 = vadd.f32 1.0, %v2679_v46  ;;  %v2681_v48 = vpop.eup %2680 }
0x2822   :  { %2682 = vrcp.f32 %v1952_v47 }
0x282f   :  { %v2683_v50 = vpop.eup %2682 }
0x2830   :  { %v1956_v51 = vsel %vm3037_vm5, %v2681_v48, %v2683_v50 }
0x2831   :  { %1962 = vrot.lane.b32.xlu0 %v1956_v51, %s2829_s4  ;;  %v1960_v55 = vmul.f32 %v1958_v54, %v1956_v51 }
0x28a3   :  { %v1963_v52 = vpop.permute.xlu0 %1962 }
0x28a4   :  { %v1965_v53 = vmul.f32 %v1963_v52, %v1956_v51 }
0x28a6   :  { %1967 = vrot.lane.b32.xlu1 %v1965_v53, %s2830_s19 }
0x2918   :  { %v1968_v56 = vpop.permute.xlu1 %1967 }
0x2919   :  { %v1970_v57 = vadd.f32 %v1968_v56, %v1960_v55 }
0x291b   :  { %2684 = vtanh.f32 %v1970_v57  ;;  %v2066_v1 = vrot.slane %v1970_v57, 7 }
0x2928   :  { %v2685_v58 = vpop.eup %2684 }
0x2929   :  { %1973 = vrot.lane.b32.xlu0 %v2685_v58, %s2829_s4 }
0x299b   :  { %v1974_v59 = vpop.permute.xlu0 %1973 }
0x299c   :  { %v1976_v60 = vmul.f32 %v1974_v59, %v1956_v51 }
0x299e   :  { %v1978_v61 = vrot.slane %v1976_v60, 6 }
0x29a0   :  { %1979 = vrot.lane.b32.xlu1 %v1978_v61, %s2830_s19 }
0x2a12   :  { %v1980_v62 = vpop.permute.xlu1 %1979 }
0x2a13   :  { %2541 = vmatmul.mubr.msk.f32.vlgmr.msra.gmra.mxu1 %vm164_vm1, %v1980_v62 }
0x2ad3   :  { %v2049_v63 = vpop.f32.mrf.mxu1 }
0x2ad4   :  { %v2054_v3 = vrot.slane %v2049_v63, 1 }
0x2ad5   :  { %v2542_v5 = vpop.f32.mrf.mxu1 }
0x2ad6   :  { %v2056_v7 = vadd.f32 %v2054_v3, %v3236_v35 }
0x2ad8   :  { %v2248_v9 = vmul.f32 -1.442695, %v2056_v7 }
0x2ada   :  { %2686 = vpow2.f32 %v2248_v9 }
0x2adb   :  { %2688 = vtanh.f32 %v2056_v7 }
0x2ae7   :  { %v2687_v10 = vpop.eup %2686 }
0x2ae8   :  { %v2060_v23 = vadd.f32 1.0, %v2687_v10  ;;  %v2689_v11 = vpop.eup %2688 }
0x2aea   :  { %2690 = vrcp.f32 %v2060_v23 }
0x2af7   :  { %v2691_v13 = vpop.eup %2690 }
0x2af8   :  { %v2064_v14 = vsel %vm3037_vm5, %v2689_v11, %v2691_v13 }
0x2af9   :  { %2070 = vrot.lane.b32.xlu0 %v2064_v14, %s2829_s4  ;;  %v2068_v0 = vmul.f32 %v2066_v1, %v2064_v14 }
0x2b6b   :  { %v2071_v15 = vpop.permute.xlu0 %2070 }
0x2b6c   :  { %v2073_v16 = vmul.f32 %v2071_v15, %v2064_v14 }
0x2b6e   :  { %2075 = vrot.lane.b32.xlu1 %v2073_v16, %s2830_s19 }
0x2be0   :  { %v2076_v35 = vpop.permute.xlu1 %2075 }
0x2be1   :  { %v2078_v49 = vadd.f32 %v2076_v35, %v2068_v0 }
0x2be3   :  { %2692 = vtanh.f32 %v2078_v49 }
0x2bf0   :  { %v2693_v21 = vpop.eup %2692 }
0x2bf1   :  { %2081 = vrot.lane.b32.xlu0 %v2693_v21, %s2829_s4 }
0x2c63   :  { %v2082_v6 = vpop.permute.xlu0 %2081 }
0x2c64   :  { %v2084_v8 = vmul.f32 %v2082_v6, %v2064_v14 }
0x2c66   :  { %v2091_v22 = vrot.slane %v2084_v8, 7 }
0x2c68   :  { %2092 = vrot.lane.b32.xlu1 %v2091_v22, %s2830_s19 }
0x2cda   :  { %v2093_v17 = vpop.permute.xlu1 %2092 }
0x2cdb   :  { %2552 = vmatmul.mubr.msk.f32.vlgmr.msra.gmra.mxu0 %vm164_vm1, %v2093_v17 }
0x2d9b   :  { %v2162_v25 = vpop.f32.mrf.mxu0 }
0x2d9c   :  { %v2163_v26 = vadd.f32 %v2162_v25, %v2089_v24 }
0x2d9d   :  { %v2553_v2 = vpop.f32.mrf.mxu0 }
0x2d9e   :  { %v2167_v19 = vsel %vm2166_vm13, %v2163_v26, -inf }
0x2d9f   :  { %2168 = vmax.xlane.f32.xlu0 %v2167_v19 }
0x2e28   :  { %v2169_v28 = vpop.xlane.xlu0 %2168 }
0x2e29   :  { %v2170_v27 = vsub.f32 %v2163_v26, %v2169_v28 }
0x2e2b   :  { %v2171_v29 = vmul.f32 1.442695, %v2170_v27 }
0x2e2d   :  { %2694 = vpow2.f32 %v2171_v29 }
0x2e3a   :  { %v2695_v4 = vpop.eup %2694 }
0x2e3b   :  { %v2173_v30 = vsel %vm2166_vm13, %v2695_v4, 0.0 }
0x2e3c   :  { %2174 = vadd.xlane.f32.xlu1 %v2173_v30 }
0x2ec5   :  { %v2175_v32 = vpop.xlane.xlu1 %2174 }
0x2ec6   :  { %2696 = vlog2.f32 %v2175_v32 }
0x2ed3   :  { %v2697_v33 = vpop.eup %2696 }
0x2ed4   :  { %v2177_v34 = vmul.f32 0.6931472, %v2697_v33 }
0x2ed6   :  { %v2178_v36 = vsub.f32 %v2170_v27, %v2177_v34 }
0x2ed8   :  { %2179 = vst.msk [vmem:[#allocation14] sm:$0x1] %vm2166_vm13, %v2178_v36 }
0x2ed9   :  { %2801 = shalt.err (!%p2798_p1)
}
0x2eda   :  { %2189 = dma.vmem_to_hbm [thread:$0]  %s2187_s11, 16, %s3389_s12, [#allocation6]  }
0x2edb   :  { %2818 = dma.done.wait [#allocation6], 16  }
0x2edc   :  { %2819 = vsyncadd [#allocation6], 4294967280 }
0x2edd   :  { %2193 = vsyncpa [#allocation5], 1 }
0x2ede   :  { %2194 = vsyncpa [#allocation10], 1 }
0x2edf   :  { %2195 = vsyncpa [#allocation13], 1 }
0x2ee0   :  { %2196 = vsyncpa [#allocation6], 1 }
0x2ee1   :  { %2197 = vsyncpa [#allocation7], 1 }

</bundles_post_ra>
